<compile_context>
chip_gen: v7x
topology: tpu7x:2x2x1
jax: 0.10.0
libtpu: 0.0.40
codegen_flags: <defaults>
</compile_context>

<pallas_src>
import functools

import jax
import jax.numpy as jnp
from jax.experimental import pallas as pl


def _tree_sum(xs):
  xs = list(xs)
  while len(xs) > 1:
    nxt = [xs[i] + xs[i + 1] for i in range(0, len(xs) - 1, 2)]
    if len(xs) % 2:
      nxt.append(xs[-1])
    xs = nxt
  return xs[0]


def _geometry(seq_len, num_sensors, hidden=32):
  """Fixed model geometry + packed-weight-blob row offsets (all static Python ints)."""
  C1, KH1, KW1 = 8, 5, 3
  C2, KH2 = 32, 5
  T, S = seq_len, num_sensors
  H1 = (T + 2 * 4 - KH1) // 2 + 1
  W1 = (S + 2 * 2 - KW1) + 1
  assert H1 % 4 == 0 and W1 % 2 == 0, "maxpool1 (4,2) must tile conv1 output exactly"
  H2, W2 = H1 // 4, W1 // 2
  H3 = (H2 + 2 * 1 - KH2) // 2 + 1
  W3 = W2 + 2
  assert H3 == 1 and H2 + 2 == KH2, "conv2 kernel must span the padded height"
  F1 = 96
  assert C2 * H3 * W3 == 192, "fc1 expects 192 input features"
  assert S == 6, "fc3(in=num_sensors) + cat(xcnn(3), xlstm(3)) requires num_sensors == 6"
  assert 4 * hidden == 128, "lane-dense LSTM gate layout assumes hidden_units == 32"
  assert 8 * KH1 * KW1 < 128, "conv1 patch lanes + ones-lane must fit in 128 lanes"
  o_w1 = 0                      # (128,128) conv1 block-diag weight (+ shift row 120)
  o_vec = o_w1 + 128            # 8 rows of per-lane vectors / biases
  o_w2 = o_vec + 8              # (H2*C1, 128) conv2 weights, tap j at rows j*C1
  o_fc1 = o_w2 + H2 * C1        # (W2*C2, 128) fc1 weights, slab q at rows q*C2
  o_fc2 = o_fc1 + W2 * C2       # (F1, 128)  fc2 composed with fc3[:, :3]
  o_wih = o_fc2 + F1            # (8, 128)   LSTM w_ih (pre-scaled) + bias row
  o_whh = o_wih + 8             # (hidden, 128) LSTM w_hh (pre-scaled)
  o_wlin = o_whh + hidden       # (hidden, 128) linear composed with fc3[:, 3:]
  rows = o_wlin + hidden
  return dict(C1=C1, C2=C2, F1=F1, KH1=KH1, KW1=KW1, H2=H2, W2=W2, W3=W3,
              w1=o_w1, vec=o_vec, w2=o_w2, fc1=o_fc1, fc2=o_fc2,
              wih=o_wih, whh=o_whh, wlin=o_wlin, rows=rows)


# ----------------------------------------------------------------------------
# The single fused Pallas kernel (gridless, everything resident in VMEM/vregs)
# ----------------------------------------------------------------------------
def _cnnlstm_kernel(patches_ref, xseq_ref, blob_ref, out_ref, *,
                    bp, seq_len, n_h2, n_w2, hid, geo):
  f32 = jnp.float32
  c1, c2, f1 = geo["C1"], geo["C2"], geo["F1"]

  # ---- conv1 (+ folded BN scale; bias rides the patches ones-lane) + ReLU.
  #      Output lanes = (pool_k, c1) in 0..63; lanes 64..127 are zero weight columns.
  w1 = blob_ref[geo["w1"]:geo["w1"] + 128, :]                       # (128, 128)
  y = jnp.maximum(jnp.dot(patches_ref[...], w1, preferred_element_type=f32), 0.0)

  # ---- maxpool1 (4,2): lane-halving tree max over the 8 pool positions.
  width = 8 * c1
  while width > c1:
    width //= 2
    y = jnp.maximum(y[:, :width], y[:, width:2 * width])
  pooled = y                                                        # (n_h2*n_w2*bp, c1)

  # ---- conv2 (+ folded BN) + ReLU over the n_h2 valid height taps; rows (w2, b).
  blk = n_w2 * bp
  taps = [jnp.dot(pooled[j * blk:(j + 1) * blk],
                  blob_ref[geo["w2"] + j * c1: geo["w2"] + (j + 1) * c1, :],
                  preferred_element_type=f32)
          for j in range(n_h2)]
  shift2 = blob_ref[geo["vec"]:geo["vec"] + 1, :]
  interior = jnp.maximum(_tree_sum(taps) + shift2, 0.0)[:, :c2]     # (n_w2*bp, c2)

  # ---- maxpool2 (k=1) = identity; fc1 + ReLU (conv2 width-pad cols folded into bias).
  slabs = [jnp.dot(interior[q * bp:(q + 1) * bp],
                   blob_ref[geo["fc1"] + q * c2: geo["fc1"] + (q + 1) * c2, :],
                   preferred_element_type=f32)
           for q in range(n_w2)]
  bfc1 = blob_ref[geo["vec"] + 1:geo["vec"] + 2, :]
  hfc = jnp.maximum(_tree_sum(slabs) + bfc1, 0.0)[:, :f1]           # (bp, f1)

  # ---- dropout (eval) = identity; fc2 composed with fc3[:, :3]; 128 padded out lanes.
  out_cnn = jnp.dot(hfc, blob_ref[geo["fc2"]:geo["fc2"] + f1, :],
                    preferred_element_type=f32)                     # (bp, 128)

  # ---- LSTM: all input-side gate pre-activations in one matmul (bias via the xseq
  #      ones-lane; sigmoid pre-scale already folded into the weights); rows (t, b).
  gx = jnp.dot(xseq_ref[...][:, :8], blob_ref[geo["wih"]:geo["wih"] + 8, :],
               preferred_element_type=f32)                          # (T*bp, 4*hid)
  whh = blob_ref[geo["whh"]:geo["whh"] + hid, :]                    # (hid, 4*hid)
  pscale = jnp.broadcast_to(blob_ref[geo["vec"] + 2:geo["vec"] + 3, :], (bp, 4 * hid))
  poff = jnp.broadcast_to(blob_ref[geo["vec"] + 3:geo["vec"] + 4, :], (bp, 4 * hid))
  h = jnp.zeros((bp, hid), f32)
  c = jnp.zeros((bp, hid), f32)
  # TODO(synk): hold whh resident in the MXU (pltpu.matmul_push_rhs/acc_lhs) and, on
  #             v7x, overlap the CNN branch on the second TensorCore via core_map.
  for t in range(seq_len):                     # fully unrolled in-VMEM recurrence
    gates = gx[t * bp:(t + 1) * bp] + jnp.dot(h, whh, preferred_element_type=f32)
    a = jnp.tanh(gates)                        # one EUP pass: tanh(z/2) i/f/o, tanh(z) g
    act = a * pscale + poff                    # -> sigmoid on i/f/o lanes, tanh on g
    i_g = act[:, 0:hid]
    f_g = act[:, hid:2 * hid]
    g_g = act[:, 2 * hid:3 * hid]
    o_g = act[:, 3 * hid:4 * hid]
    c = f_g * c + i_g * g_g
    h = o_g * jnp.tanh(c)
  out_lstm = jnp.dot(h, blob_ref[geo["wlin"]:geo["wlin"] + hid, :],
                     preferred_element_type=f32)                    # (bp, 128)

  # ---- merge: fc3 already composed into the two branch heads; lane-dense store.
  out_ref[...] = out_cnn + out_lstm + blob_ref[geo["vec"] + 4:geo["vec"] + 5, :]


# ----------------------------------------------------------------------------
# One-time parameter folding + packing into a single (rows, 128) weight blob.
# ----------------------------------------------------------------------------
def prepare_params(params, seq_len, num_sensors, hidden=32):
  geo = _geometry(seq_len, num_sensors, hidden)
  eps = 1e-5
  f32 = jnp.float32
  C1, C2, F1 = geo["C1"], geo["C2"], geo["F1"]
  KH1, KW1 = geo["KH1"], geo["KW1"]
  H2, W2, W3 = geo["H2"], geo["W2"], geo["W3"]
  HID = hidden

  # conv1 + BatchNorm1 (eval running stats) fold; block-diagonal per pool position.
  s1 = params["g1"] / jnp.sqrt(params["v1"] + eps)
  w1f = params["w1"].reshape(C1, KH1 * KW1) * s1[:, None]                  # (8, 15)
  shift1 = (params["b1"] - params["m1"]) * s1 + params["be1"]              # (8,)
  region_w1 = jnp.zeros((128, 128), f32)
  for k in range(8):                                 # lanes (k, c1); rows (k, tap)
    region_w1 = region_w1.at[k * KH1 * KW1:(k + 1) * KH1 * KW1,
                             k * C1:(k + 1) * C1].set(w1f.T)
  region_w1 = region_w1.at[8 * KH1 * KW1, :8 * C1].set(jnp.tile(shift1, 8))

  # conv2 + BatchNorm2 fold (only the H2 valid height taps contribute; pads are zero).
  s2 = params["g2"] / jnp.sqrt(params["v2"] + eps)
  w2k = params["w2"][:, :, 1:1 + H2, 0]                                    # (32, 8, H2)
  w2_eff = jnp.transpose(w2k, (2, 1, 0)).reshape(H2 * C1, C2) * s2[None, :]
  shift2 = (params["b2"] - params["m2"]) * s2 + params["be2"]              # (32,)
  region_w2 = jnp.zeros((H2 * C1, 128), f32).at[:, :C2].set(w2_eff)

  # fc1: conv2 width-padding columns only ever see relu(shift2) -> fold into bias.
  fc1_w3 = params["fc1_w"].reshape(F1, C2, W3)
  pad_val = jnp.maximum(shift2, 0.0)
  bfc1_eff = params["fc1_b"] + (fc1_w3[:, :, 0] + fc1_w3[:, :, W3 - 1]) @ pad_val
  wfc1_eff = jnp.transpose(fc1_w3[:, :, 1:1 + W2], (2, 1, 0)).reshape(W2 * C2, F1)
  region_fc1 = jnp.zeros((W2 * C2, 128), f32).at[:, :F1].set(wfc1_eff)

  # fc2 o fc3[:, :3] and linear o fc3[:, 3:] compositions (dropout eval = identity).
  fc3a = params["fc3_w"][:, 0:3]
  fc3b = params["fc3_w"][:, 3:6]
  wfc2a = params["fc2_w"].T @ fc3a.T                                       # (96, 3)
  wlinb = params["lin_w"].T @ fc3b.T                                       # (32, 3)
  out_bias = params["fc3_b"] + params["fc2_b"] @ fc3a.T + params["lin_b"] @ fc3b.T
  region_fc2 = jnp.zeros((F1, 128), f32).at[:, :3].set(wfc2a)
  region_wlin = jnp.zeros((HID, 128), f32).at[:, :3].set(wlinb)

  # LSTM: fold the sigmoid-via-tanh pre-scale (0.5 on i/f/o gate columns) into the
  # weights/bias (PyTorch gate order i, f, g, o); bias rides the xseq ones-lane.
  pre = jnp.concatenate([jnp.full((2 * HID,), 0.5), jnp.ones((HID,)),
                         jnp.full((HID,), 0.5)]).astype(f32)
  wih_s = params["w_ih"].T * pre[None, :]                                  # (S, 128)
  whh_s = (params["w_hh"].T * pre[None, :]).astype(f32)                    # (32, 128)
  b_s = (params["b_ih"] + params["b_hh"]) * pre
  region_wih = jnp.zeros((8, 128), f32)
  region_wih = region_wih.at[:num_sensors, :].set(wih_s).at[num_sensors, :].set(b_s)

  post_scale = jnp.concatenate([jnp.full((2 * HID,), 0.5), jnp.ones((HID,)),
                                jnp.full((HID,), 0.5)]).astype(f32)
  post_off = jnp.concatenate([jnp.full((2 * HID,), 0.5), jnp.zeros((HID,)),
                              jnp.full((HID,), 0.5)]).astype(f32)

  region_vec = jnp.zeros((8, 128), f32)
  region_vec = region_vec.at[0, :C2].set(shift2)
  region_vec = region_vec.at[1, :F1].set(bfc1_eff)
  region_vec = region_vec.at[2, :].set(post_scale)
  region_vec = region_vec.at[3, :].set(post_off)
  region_vec = region_vec.at[4, :3].set(out_bias)

  blob = jnp.concatenate([region_w1, region_vec, region_w2, region_fc1,
                          region_fc2, region_wih, whh_s, region_wlin], axis=0)
  assert blob.shape == (geo["rows"], 128), blob.shape
  return blob.astype(f32)


# ----------------------------------------------------------------------------
# Per-call wrapper: only input layout (im2col + lane padding) stays in the hot path.
# ----------------------------------------------------------------------------
def cnn_lstm_forward(x, blob, hidden=32):
  B, T, S = x.shape
  geo = _geometry(T, S, hidden)
  f32 = jnp.float32
  x = x.astype(f32)
  H2, W2, KH1, KW1 = geo["H2"], geo["W2"], geo["KH1"], geo["KW1"]

  # Pad batch to a full sublane group; padded rows are junk and dropped at the end.
  BP = max(8, -(-B // 8) * 8)
  xp = jnp.pad(x, ((0, BP - B), (0, 0), (0, 0)))

  # im2col for conv1: rows (h2, w2, b), lanes (pool_k, tap) + ones-lane for the bias.
  x_pad = jnp.pad(xp, ((0, 0), (4, 4), (2, 2)))
  h2i = jnp.arange(H2).reshape(H2, 1, 1, 1, 1, 1, 1)
  w2i = jnp.arange(W2).reshape(1, W2, 1, 1, 1, 1, 1)
  bbi = jnp.arange(BP).reshape(1, 1, BP, 1, 1, 1, 1)
  ph = jnp.arange(4).reshape(1, 1, 1, 4, 1, 1, 1)
  pw = jnp.arange(2).reshape(1, 1, 1, 1, 2, 1, 1)
  rri = jnp.arange(KH1).reshape(1, 1, 1, 1, 1, KH1, 1)
  ssi = jnp.arange(KW1).reshape(1, 1, 1, 1, 1, 1, KW1)
  row = 2 * (4 * h2i + ph) + rri
  col = (2 * w2i + pw) + ssi
  np_rows = H2 * W2 * BP
  patches = x_pad[bbi, row, col].reshape(np_rows, 8 * KH1 * KW1)
  patches = jnp.concatenate(
      [patches, jnp.ones((np_rows, 1), f32),
       jnp.zeros((np_rows, 128 - 8 * KH1 * KW1 - 1), f32)], axis=1)       # (rows, 128)

  # LSTM inputs: rows (t, b), lane-dense 128 wide, lane S = 1.0 carries the gate bias.
  x_tb = jnp.transpose(xp, (1, 0, 2)).reshape(T * BP, S)
  xseq = jnp.concatenate(
      [x_tb, jnp.ones((T * BP, 1), f32),
       jnp.zeros((T * BP, 128 - S - 1), f32)], axis=1)                    # (T*BP, 128)

  kern = functools.partial(_cnnlstm_kernel, bp=BP, seq_len=T,
                           n_h2=H2, n_w2=W2, hid=hidden, geo=geo)
  out = pl.pallas_call(
      kern,
      out_shape=jax.ShapeDtypeStruct((BP, 128), f32),
  )(patches, xseq, blob)
  return out[:B, :3]


# ----------------------------------------------------------------------------
# Parameter init (shapes follow CNNLSTM.__init__; deterministic synthetic values)
# ----------------------------------------------------------------------------
def init_params(key, num_sensors=6, hidden=32):
  ks = jax.random.split(key, 24)

  def n(i, shape, s=0.1):
    return s * jax.random.normal(ks[i], shape, jnp.float32)

  p = {}
  p["w1"] = n(0, (8, 1, 5, 3)); p["b1"] = n(1, (8,))
  p["g1"] = 1.0 + n(2, (8,));   p["be1"] = n(3, (8,))
  p["m1"] = n(4, (8,));         p["v1"] = 1.0 + jnp.abs(n(5, (8,)))
  p["w2"] = n(6, (32, 8, 5, 1)); p["b2"] = n(7, (32,))
  p["g2"] = 1.0 + n(8, (32,));   p["be2"] = n(9, (32,))
  p["m2"] = n(10, (32,));        p["v2"] = 1.0 + jnp.abs(n(11, (32,)))
  p["fc1_w"] = n(12, (96, 192)); p["fc1_b"] = n(13, (96,))
  p["fc2_w"] = n(14, (3, 96));   p["fc2_b"] = n(15, (3,))
  p["fc3_w"] = n(16, (3, num_sensors)); p["fc3_b"] = n(17, (3,))
  p["lin_w"] = n(18, (3, hidden));      p["lin_b"] = n(19, (3,))
  p["w_ih"] = n(20, (4 * hidden, num_sensors))
  p["w_hh"] = n(21, (4 * hidden, hidden))
  p["b_ih"] = n(22, (4 * hidden,))
  p["b_hh"] = n(23, (4 * hidden,))
  return p


# ----------------------------------------------------------------------------
# Pure-JAX reference (eval-mode semantics of the PyTorch module)
# ----------------------------------------------------------------------------
def reference_forward(x, params, hidden=32):
  eps = 1e-5
  B, T, S = x.shape
  x = x.astype(jnp.float32)

  def bn(z, g, be, m, v):
    s = g / jnp.sqrt(v + eps)
    return z * s[None, :, None, None] + (be - m * s)[None, :, None, None]

  y = jax.lax.conv_general_dilated(x[:, None, :, :], params["w1"], (2, 1),
                                   ((4, 4), (2, 2)),
                                   dimension_numbers=("NCHW", "OIHW", "NCHW"))
  y = y + params["b1"][None, :, None, None]
  y = jnp.maximum(bn(y, params["g1"], params["be1"], params["m1"], params["v1"]), 0.0)
  y = jax.lax.reduce_window(y, -jnp.inf, jax.lax.max, (1, 1, 4, 2), (1, 1, 4, 2), "VALID")
  y = jax.lax.conv_general_dilated(y, params["w2"], (2, 1), ((1, 1), (1, 1)),
                                   dimension_numbers=("NCHW", "OIHW", "NCHW"))
  y = y + params["b2"][None, :, None, None]
  y = jnp.maximum(bn(y, params["g2"], params["be2"], params["m2"], params["v2"]), 0.0)
  flat = y.reshape(B, -1)
  h = jnp.maximum(flat @ params["fc1_w"].T + params["fc1_b"], 0.0)
  xcnn = h @ params["fc2_w"].T + params["fc2_b"]

  H = hidden
  hs = jnp.zeros((B, H), jnp.float32)
  cs = jnp.zeros((B, H), jnp.float32)
  for t in range(T):
    gates = (x[:, t, :] @ params["w_ih"].T + params["b_ih"]
             + hs @ params["w_hh"].T + params["b_hh"])
    i = jax.nn.sigmoid(gates[:, 0:H]); f = jax.nn.sigmoid(gates[:, H:2 * H])
    g = jnp.tanh(gates[:, 2 * H:3 * H]); o = jax.nn.sigmoid(gates[:, 3 * H:4 * H])
    cs = f * cs + i * g
    hs = o * jnp.tanh(cs)
  xlstm = hs @ params["lin_w"].T + params["lin_b"]
  return jnp.concatenate([xcnn, xlstm], axis=1) @ params["fc3_w"].T + params["fc3_b"]


# ----------------------------------------------------------------------------
if __name__ == "__main__":
  B, T, S, HU = 2, 20, 6, 32   # seq=20, num_sensors=6 -> fc1 in=192, fc3 in=6
  key = jax.random.PRNGKey(0)
  kp, kx = jax.random.split(key)
  params = init_params(kp, num_sensors=S, hidden=HU)
  x = jax.random.normal(kx, (B, T, S), jnp.float32)

  blob = prepare_params(params, seq_len=T, num_sensors=S, hidden=HU)   # one-time pack
  fwd = jax.jit(functools.partial(cnn_lstm_forward, hidden=HU))
  out = jax.block_until_ready(fwd(x, blob))

  ref = reference_forward(x, params, hidden=HU)
  assert out.shape == (B, 3), out.shape
  assert bool(jnp.all(jnp.isfinite(out)))
  assert bool(jnp.allclose(out, ref, atol=5e-3, rtol=5e-3)), (out, ref)
  print("KERNEL_OK")
</pallas_src>

<mosaic_0001>
module attributes {stable_mosaic.version = 11 : i64} {
  func.func @_cnnlstm_kernel(%arg0: memref<96x128xf32, #tpu.memory_space<vmem>>, %arg1: memref<160x128xf32, #tpu.memory_space<vmem>>, %arg2: memref<456x128xf32, #tpu.memory_space<vmem>>, %arg3: memref<8x128xf32, #tpu.memory_space<vmem>>) attributes {dimension_semantics = [], scalar_prefetch = 0 : i64, scratch_operands = 0 : i64, tpu.core_type = #tpu.core_type<tc>} {
    %c0 = arith.constant 0 : index
    %c0_0 = arith.constant 0 : index
    %0 = vector.load %arg2[%c0, %c0_0] : memref<456x128xf32, #tpu.memory_space<vmem>>, vector<128x128xf32>
    %c0_1 = arith.constant 0 : index
    %c0_2 = arith.constant 0 : index
    %1 = vector.load %arg0[%c0_1, %c0_2] : memref<96x128xf32, #tpu.memory_space<vmem>>, vector<96x128xf32>
    %cst = arith.constant dense<0.000000e+00> : vector<96x128xf32>
    %2 = tpu.matmul %1, %0, %cst {dimension_numbers = #tpu.dot_dimension_numbers<[1], [0], [0], [1], [0, 0, 1, 1], [], []>} : vector<96x128xf32>, vector<128x128xf32>, vector<96x128xf32> -> vector<96x128xf32>
    %cst_3 = arith.constant 0.000000e+00 : f32
    %3 = vector.broadcast %cst_3 : f32 to vector<96x128xf32>
    %4 = arith.maximumf %2, %3 : vector<96x128xf32>
    %5 = vector.extract_strided_slice %4 {offsets = [0, 0], sizes = [96, 32], strides = [1, 1]} : vector<96x128xf32> to vector<96x32xf32>
    %6 = vector.extract_strided_slice %4 {offsets = [0, 32], sizes = [96, 32], strides = [1, 1]} : vector<96x128xf32> to vector<96x32xf32>
    %7 = arith.maximumf %5, %6 : vector<96x32xf32>
    %8 = vector.extract_strided_slice %7 {offsets = [0, 0], sizes = [96, 16], strides = [1, 1]} : vector<96x32xf32> to vector<96x16xf32>
    %9 = vector.extract_strided_slice %7 {offsets = [0, 16], sizes = [96, 16], strides = [1, 1]} : vector<96x32xf32> to vector<96x16xf32>
    %10 = arith.maximumf %8, %9 : vector<96x16xf32>
    %11 = vector.extract_strided_slice %10 {offsets = [0, 0], sizes = [96, 8], strides = [1, 1]} : vector<96x16xf32> to vector<96x8xf32>
    %12 = vector.extract_strided_slice %10 {offsets = [0, 8], sizes = [96, 8], strides = [1, 1]} : vector<96x16xf32> to vector<96x8xf32>
    %13 = arith.maximumf %11, %12 : vector<96x8xf32>
    %14 = vector.extract_strided_slice %13 {offsets = [0, 0], sizes = [32, 8], strides = [1, 1]} : vector<96x8xf32> to vector<32x8xf32>
    %c136 = arith.constant 136 : index
    %c0_4 = arith.constant 0 : index
    %15 = vector.load %arg2[%c136, %c0_4] : memref<456x128xf32, #tpu.memory_space<vmem>>, vector<8x128xf32>
    %cst_5 = arith.constant dense<0.000000e+00> : vector<32x128xf32>
    %16 = tpu.matmul %14, %15, %cst_5 {dimension_numbers = #tpu.dot_dimension_numbers<[1], [0], [0], [1], [0, 0, 1, 1], [], []>} : vector<32x8xf32>, vector<8x128xf32>, vector<32x128xf32> -> vector<32x128xf32>
    %17 = vector.extract_strided_slice %13 {offsets = [32, 0], sizes = [32, 8], strides = [1, 1]} : vector<96x8xf32> to vector<32x8xf32>
    %c144 = arith.constant 144 : index
    %c0_6 = arith.constant 0 : index
    %18 = vector.load %arg2[%c144, %c0_6] : memref<456x128xf32, #tpu.memory_space<vmem>>, vector<8x128xf32>
    %cst_7 = arith.constant dense<0.000000e+00> : vector<32x128xf32>
    %19 = tpu.matmul %17, %18, %cst_7 {dimension_numbers = #tpu.dot_dimension_numbers<[1], [0], [0], [1], [0, 0, 1, 1], [], []>} : vector<32x8xf32>, vector<8x128xf32>, vector<32x128xf32> -> vector<32x128xf32>
    %20 = vector.extract_strided_slice %13 {offsets = [64, 0], sizes = [32, 8], strides = [1, 1]} : vector<96x8xf32> to vector<32x8xf32>
    %c152 = arith.constant 152 : index
    %c0_8 = arith.constant 0 : index
    %21 = vector.load %arg2[%c152, %c0_8] : memref<456x128xf32, #tpu.memory_space<vmem>>, vector<8x128xf32>
    %cst_9 = arith.constant dense<0.000000e+00> : vector<32x128xf32>
    %22 = tpu.matmul %20, %21, %cst_9 {dimension_numbers = #tpu.dot_dimension_numbers<[1], [0], [0], [1], [0, 0, 1, 1], [], []>} : vector<32x8xf32>, vector<8x128xf32>, vector<32x128xf32> -> vector<32x128xf32>
    %c128 = arith.constant 128 : index
    %c0_10 = arith.constant 0 : index
    %23 = vector.load %arg2[%c128, %c0_10] : memref<456x128xf32, #tpu.memory_space<vmem>>, vector<1x128xf32>
    %24 = arith.addf %16, %19 : vector<32x128xf32>
    %25 = arith.addf %24, %22 : vector<32x128xf32>
    %26 = vector.broadcast %23 : vector<1x128xf32> to vector<32x128xf32>
    %27 = arith.addf %25, %26 : vector<32x128xf32>
    %cst_11 = arith.constant 0.000000e+00 : f32
    %28 = vector.broadcast %cst_11 : f32 to vector<32x128xf32>
    %29 = arith.maximumf %27, %28 : vector<32x128xf32>
    %30 = vector.extract_strided_slice %29 {offsets = [0, 0], sizes = [32, 32], strides = [1, 1]} : vector<32x128xf32> to vector<32x32xf32>
    %31 = vector.extract_strided_slice %30 {offsets = [0, 0], sizes = [8, 32], strides = [1, 1]} : vector<32x32xf32> to vector<8x32xf32>
    %c160 = arith.constant 160 : index
    %c0_12 = arith.constant 0 : index
    %32 = vector.load %arg2[%c160, %c0_12] : memref<456x128xf32, #tpu.memory_space<vmem>>, vector<32x128xf32>
    %cst_13 = arith.constant dense<0.000000e+00> : vector<8x128xf32>
    %33 = tpu.matmul %31, %32, %cst_13 {dimension_numbers = #tpu.dot_dimension_numbers<[1], [0], [0], [1], [0, 0, 1, 1], [], []>} : vector<8x32xf32>, vector<32x128xf32>, vector<8x128xf32> -> vector<8x128xf32>
    %34 = vector.extract_strided_slice %30 {offsets = [8, 0], sizes = [8, 32], strides = [1, 1]} : vector<32x32xf32> to vector<8x32xf32>
    %c192 = arith.constant 192 : index
    %c0_14 = arith.constant 0 : index
    %35 = vector.load %arg2[%c192, %c0_14] : memref<456x128xf32, #tpu.memory_space<vmem>>, vector<32x128xf32>
    %cst_15 = arith.constant dense<0.000000e+00> : vector<8x128xf32>
    %36 = tpu.matmul %34, %35, %cst_15 {dimension_numbers = #tpu.dot_dimension_numbers<[1], [0], [0], [1], [0, 0, 1, 1], [], []>} : vector<8x32xf32>, vector<32x128xf32>, vector<8x128xf32> -> vector<8x128xf32>
    %37 = vector.extract_strided_slice %30 {offsets = [16, 0], sizes = [8, 32], strides = [1, 1]} : vector<32x32xf32> to vector<8x32xf32>
    %c224 = arith.constant 224 : index
    %c0_16 = arith.constant 0 : index
    %38 = vector.load %arg2[%c224, %c0_16] : memref<456x128xf32, #tpu.memory_space<vmem>>, vector<32x128xf32>
    %cst_17 = arith.constant dense<0.000000e+00> : vector<8x128xf32>
    %39 = tpu.matmul %37, %38, %cst_17 {dimension_numbers = #tpu.dot_dimension_numbers<[1], [0], [0], [1], [0, 0, 1, 1], [], []>} : vector<8x32xf32>, vector<32x128xf32>, vector<8x128xf32> -> vector<8x128xf32>
    %40 = vector.extract_strided_slice %30 {offsets = [24, 0], sizes = [8, 32], strides = [1, 1]} : vector<32x32xf32> to vector<8x32xf32>
    %c256 = arith.constant 256 : index
    %c0_18 = arith.constant 0 : index
    %41 = vector.load %arg2[%c256, %c0_18] : memref<456x128xf32, #tpu.memory_space<vmem>>, vector<32x128xf32>
    %cst_19 = arith.constant dense<0.000000e+00> : vector<8x128xf32>
    %42 = tpu.matmul %40, %41, %cst_19 {dimension_numbers = #tpu.dot_dimension_numbers<[1], [0], [0], [1], [0, 0, 1, 1], [], []>} : vector<8x32xf32>, vector<32x128xf32>, vector<8x128xf32> -> vector<8x128xf32>
    %c129 = arith.constant 129 : index
    %c0_20 = arith.constant 0 : index
    %43 = vector.load %arg2[%c129, %c0_20] : memref<456x128xf32, #tpu.memory_space<vmem>>, vector<1x128xf32>
    %44 = arith.addf %33, %36 : vector<8x128xf32>
    %45 = arith.addf %39, %42 : vector<8x128xf32>
    %46 = arith.addf %44, %45 : vector<8x128xf32>
    %47 = vector.broadcast %43 : vector<1x128xf32> to vector<8x128xf32>
    %48 = arith.addf %46, %47 : vector<8x128xf32>
    %cst_21 = arith.constant 0.000000e+00 : f32
    %49 = vector.broadcast %cst_21 : f32 to vector<8x128xf32>
    %50 = arith.maximumf %48, %49 : vector<8x128xf32>
    %51 = vector.extract_strided_slice %50 {offsets = [0, 0], sizes = [8, 96], strides = [1, 1]} : vector<8x128xf32> to vector<8x96xf32>
    %c288 = arith.constant 288 : index
    %c0_22 = arith.constant 0 : index
    %52 = vector.load %arg2[%c288, %c0_22] : memref<456x128xf32, #tpu.memory_space<vmem>>, vector<96x128xf32>
    %cst_23 = arith.constant dense<0.000000e+00> : vector<8x128xf32>
    %53 = tpu.matmul %51, %52, %cst_23 {dimension_numbers = #tpu.dot_dimension_numbers<[1], [0], [0], [1], [0, 0, 1, 1], [], []>} : vector<8x96xf32>, vector<96x128xf32>, vector<8x128xf32> -> vector<8x128xf32>
    %c0_24 = arith.constant 0 : index
    %c0_25 = arith.constant 0 : index
    %54 = vector.load %arg1[%c0_24, %c0_25] : memref<160x128xf32, #tpu.memory_space<vmem>>, vector<160x128xf32>
    %55 = vector.extract_strided_slice %54 {offsets = [0, 0], sizes = [160, 8], strides = [1, 1]} : vector<160x128xf32> to vector<160x8xf32>
    %c384 = arith.constant 384 : index
    %c0_26 = arith.constant 0 : index
    %56 = vector.load %arg2[%c384, %c0_26] : memref<456x128xf32, #tpu.memory_space<vmem>>, vector<8x128xf32>
    %cst_27 = arith.constant dense<0.000000e+00> : vector<160x128xf32>
    %57 = tpu.matmul %55, %56, %cst_27 {dimension_numbers = #tpu.dot_dimension_numbers<[1], [0], [0], [1], [0, 0, 1, 1], [], []>} : vector<160x8xf32>, vector<8x128xf32>, vector<160x128xf32> -> vector<160x128xf32>
    %c392 = arith.constant 392 : index
    %c0_28 = arith.constant 0 : index
    %58 = vector.load %arg2[%c392, %c0_28] : memref<456x128xf32, #tpu.memory_space<vmem>>, vector<32x128xf32>
    %c130 = arith.constant 130 : index
    %c0_29 = arith.constant 0 : index
    %59 = vector.load %arg2[%c130, %c0_29] : memref<456x128xf32, #tpu.memory_space<vmem>>, vector<1x128xf32>
    %60 = vector.shape_cast %59 : vector<1x128xf32> to vector<1x128xf32>
    %61 = vector.broadcast %60 : vector<1x128xf32> to vector<8x128xf32>
    %c131 = arith.constant 131 : index
    %c0_30 = arith.constant 0 : index
    %62 = vector.load %arg2[%c131, %c0_30] : memref<456x128xf32, #tpu.memory_space<vmem>>, vector<1x128xf32>
    %63 = vector.shape_cast %62 : vector<1x128xf32> to vector<1x128xf32>
    %64 = vector.broadcast %63 : vector<1x128xf32> to vector<8x128xf32>
    %cst_31 = arith.constant 0.000000e+00 : f32
    %65 = vector.broadcast %cst_31 : f32 to vector<8x32xf32>
    %cst_32 = arith.constant 0.000000e+00 : f32
    %66 = vector.broadcast %cst_32 : f32 to vector<8x32xf32>
    %67 = vector.extract_strided_slice %57 {offsets = [0, 0], sizes = [8, 128], strides = [1, 1]} : vector<160x128xf32> to vector<8x128xf32>
    %cst_33 = arith.constant dense<0.000000e+00> : vector<8x128xf32>
    %68 = tpu.matmul %65, %58, %cst_33 {dimension_numbers = #tpu.dot_dimension_numbers<[1], [0], [0], [1], [0, 0, 1, 1], [], []>} : vector<8x32xf32>, vector<32x128xf32>, vector<8x128xf32> -> vector<8x128xf32>
    %69 = arith.addf %67, %68 : vector<8x128xf32>
    %70 = math.tanh %69 : vector<8x128xf32>
    %71 = arith.mulf %70, %61 : vector<8x128xf32>
    %72 = arith.addf %71, %64 : vector<8x128xf32>
    %73 = vector.extract_strided_slice %72 {offsets = [0, 0], sizes = [8, 32], strides = [1, 1]} : vector<8x128xf32> to vector<8x32xf32>
    %74 = vector.extract_strided_slice %72 {offsets = [0, 32], sizes = [8, 32], strides = [1, 1]} : vector<8x128xf32> to vector<8x32xf32>
    %75 = vector.extract_strided_slice %72 {offsets = [0, 64], sizes = [8, 32], strides = [1, 1]} : vector<8x128xf32> to vector<8x32xf32>
    %76 = vector.extract_strided_slice %72 {offsets = [0, 96], sizes = [8, 32], strides = [1, 1]} : vector<8x128xf32> to vector<8x32xf32>
    %77 = arith.mulf %74, %66 : vector<8x32xf32>
    %78 = arith.mulf %73, %75 : vector<8x32xf32>
    %79 = arith.addf %77, %78 : vector<8x32xf32>
    %80 = math.tanh %79 : vector<8x32xf32>
    %81 = arith.mulf %76, %80 : vector<8x32xf32>
    %82 = vector.extract_strided_slice %57 {offsets = [8, 0], sizes = [8, 128], strides = [1, 1]} : vector<160x128xf32> to vector<8x128xf32>
    %cst_34 = arith.constant dense<0.000000e+00> : vector<8x128xf32>
    %83 = tpu.matmul %81, %58, %cst_34 {dimension_numbers = #tpu.dot_dimension_numbers<[1], [0], [0], [1], [0, 0, 1, 1], [], []>} : vector<8x32xf32>, vector<32x128xf32>, vector<8x128xf32> -> vector<8x128xf32>
    %84 = arith.addf %82, %83 : vector<8x128xf32>
    %85 = math.tanh %84 : vector<8x128xf32>
    %86 = arith.mulf %85, %61 : vector<8x128xf32>
    %87 = arith.addf %86, %64 : vector<8x128xf32>
    %88 = vector.extract_strided_slice %87 {offsets = [0, 0], sizes = [8, 32], strides = [1, 1]} : vector<8x128xf32> to vector<8x32xf32>
    %89 = vector.extract_strided_slice %87 {offsets = [0, 32], sizes = [8, 32], strides = [1, 1]} : vector<8x128xf32> to vector<8x32xf32>
    %90 = vector.extract_strided_slice %87 {offsets = [0, 64], sizes = [8, 32], strides = [1, 1]} : vector<8x128xf32> to vector<8x32xf32>
    %91 = vector.extract_strided_slice %87 {offsets = [0, 96], sizes = [8, 32], strides = [1, 1]} : vector<8x128xf32> to vector<8x32xf32>
    %92 = arith.mulf %89, %79 : vector<8x32xf32>
    %93 = arith.mulf %88, %90 : vector<8x32xf32>
    %94 = arith.addf %92, %93 : vector<8x32xf32>
    %95 = math.tanh %94 : vector<8x32xf32>
    %96 = arith.mulf %91, %95 : vector<8x32xf32>
    %97 = vector.extract_strided_slice %57 {offsets = [16, 0], sizes = [8, 128], strides = [1, 1]} : vector<160x128xf32> to vector<8x128xf32>
    %cst_35 = arith.constant dense<0.000000e+00> : vector<8x128xf32>
    %98 = tpu.matmul %96, %58, %cst_35 {dimension_numbers = #tpu.dot_dimension_numbers<[1], [0], [0], [1], [0, 0, 1, 1], [], []>} : vector<8x32xf32>, vector<32x128xf32>, vector<8x128xf32> -> vector<8x128xf32>
    %99 = arith.addf %97, %98 : vector<8x128xf32>
    %100 = math.tanh %99 : vector<8x128xf32>
    %101 = arith.mulf %100, %61 : vector<8x128xf32>
    %102 = arith.addf %101, %64 : vector<8x128xf32>
    %103 = vector.extract_strided_slice %102 {offsets = [0, 0], sizes = [8, 32], strides = [1, 1]} : vector<8x128xf32> to vector<8x32xf32>
    %104 = vector.extract_strided_slice %102 {offsets = [0, 32], sizes = [8, 32], strides = [1, 1]} : vector<8x128xf32> to vector<8x32xf32>
    %105 = vector.extract_strided_slice %102 {offsets = [0, 64], sizes = [8, 32], strides = [1, 1]} : vector<8x128xf32> to vector<8x32xf32>
    %106 = vector.extract_strided_slice %102 {offsets = [0, 96], sizes = [8, 32], strides = [1, 1]} : vector<8x128xf32> to vector<8x32xf32>
    %107 = arith.mulf %104, %94 : vector<8x32xf32>
    %108 = arith.mulf %103, %105 : vector<8x32xf32>
    %109 = arith.addf %107, %108 : vector<8x32xf32>
    %110 = math.tanh %109 : vector<8x32xf32>
    %111 = arith.mulf %106, %110 : vector<8x32xf32>
    %112 = vector.extract_strided_slice %57 {offsets = [24, 0], sizes = [8, 128], strides = [1, 1]} : vector<160x128xf32> to vector<8x128xf32>
    %cst_36 = arith.constant dense<0.000000e+00> : vector<8x128xf32>
    %113 = tpu.matmul %111, %58, %cst_36 {dimension_numbers = #tpu.dot_dimension_numbers<[1], [0], [0], [1], [0, 0, 1, 1], [], []>} : vector<8x32xf32>, vector<32x128xf32>, vector<8x128xf32> -> vector<8x128xf32>
    %114 = arith.addf %112, %113 : vector<8x128xf32>
    %115 = math.tanh %114 : vector<8x128xf32>
    %116 = arith.mulf %115, %61 : vector<8x128xf32>
    %117 = arith.addf %116, %64 : vector<8x128xf32>
    %118 = vector.extract_strided_slice %117 {offsets = [0, 0], sizes = [8, 32], strides = [1, 1]} : vector<8x128xf32> to vector<8x32xf32>
    %119 = vector.extract_strided_slice %117 {offsets = [0, 32], sizes = [8, 32], strides = [1, 1]} : vector<8x128xf32> to vector<8x32xf32>
    %120 = vector.extract_strided_slice %117 {offsets = [0, 64], sizes = [8, 32], strides = [1, 1]} : vector<8x128xf32> to vector<8x32xf32>
    %121 = vector.extract_strided_slice %117 {offsets = [0, 96], sizes = [8, 32], strides = [1, 1]} : vector<8x128xf32> to vector<8x32xf32>
    %122 = arith.mulf %119, %109 : vector<8x32xf32>
    %123 = arith.mulf %118, %120 : vector<8x32xf32>
    %124 = arith.addf %122, %123 : vector<8x32xf32>
    %125 = math.tanh %124 : vector<8x32xf32>
    %126 = arith.mulf %121, %125 : vector<8x32xf32>
    %127 = vector.extract_strided_slice %57 {offsets = [32, 0], sizes = [8, 128], strides = [1, 1]} : vector<160x128xf32> to vector<8x128xf32>
    %cst_37 = arith.constant dense<0.000000e+00> : vector<8x128xf32>
    %128 = tpu.matmul %126, %58, %cst_37 {dimension_numbers = #tpu.dot_dimension_numbers<[1], [0], [0], [1], [0, 0, 1, 1], [], []>} : vector<8x32xf32>, vector<32x128xf32>, vector<8x128xf32> -> vector<8x128xf32>
    %129 = arith.addf %127, %128 : vector<8x128xf32>
    %130 = math.tanh %129 : vector<8x128xf32>
    %131 = arith.mulf %130, %61 : vector<8x128xf32>
    %132 = arith.addf %131, %64 : vector<8x128xf32>
    %133 = vector.extract_strided_slice %132 {offsets = [0, 0], sizes = [8, 32], strides = [1, 1]} : vector<8x128xf32> to vector<8x32xf32>
    %134 = vector.extract_strided_slice %132 {offsets = [0, 32], sizes = [8, 32], strides = [1, 1]} : vector<8x128xf32> to vector<8x32xf32>
    %135 = vector.extract_strided_slice %132 {offsets = [0, 64], sizes = [8, 32], strides = [1, 1]} : vector<8x128xf32> to vector<8x32xf32>
    %136 = vector.extract_strided_slice %132 {offsets = [0, 96], sizes = [8, 32], strides = [1, 1]} : vector<8x128xf32> to vector<8x32xf32>
    %137 = arith.mulf %134, %124 : vector<8x32xf32>
    %138 = arith.mulf %133, %135 : vector<8x32xf32>
    %139 = arith.addf %137, %138 : vector<8x32xf32>
    %140 = math.tanh %139 : vector<8x32xf32>
    %141 = arith.mulf %136, %140 : vector<8x32xf32>
    %142 = vector.extract_strided_slice %57 {offsets = [40, 0], sizes = [8, 128], strides = [1, 1]} : vector<160x128xf32> to vector<8x128xf32>
    %cst_38 = arith.constant dense<0.000000e+00> : vector<8x128xf32>
    %143 = tpu.matmul %141, %58, %cst_38 {dimension_numbers = #tpu.dot_dimension_numbers<[1], [0], [0], [1], [0, 0, 1, 1], [], []>} : vector<8x32xf32>, vector<32x128xf32>, vector<8x128xf32> -> vector<8x128xf32>
    %144 = arith.addf %142, %143 : vector<8x128xf32>
    %145 = math.tanh %144 : vector<8x128xf32>
    %146 = arith.mulf %145, %61 : vector<8x128xf32>
    %147 = arith.addf %146, %64 : vector<8x128xf32>
    %148 = vector.extract_strided_slice %147 {offsets = [0, 0], sizes = [8, 32], strides = [1, 1]} : vector<8x128xf32> to vector<8x32xf32>
    %149 = vector.extract_strided_slice %147 {offsets = [0, 32], sizes = [8, 32], strides = [1, 1]} : vector<8x128xf32> to vector<8x32xf32>
    %150 = vector.extract_strided_slice %147 {offsets = [0, 64], sizes = [8, 32], strides = [1, 1]} : vector<8x128xf32> to vector<8x32xf32>
    %151 = vector.extract_strided_slice %147 {offsets = [0, 96], sizes = [8, 32], strides = [1, 1]} : vector<8x128xf32> to vector<8x32xf32>
    %152 = arith.mulf %149, %139 : vector<8x32xf32>
    %153 = arith.mulf %148, %150 : vector<8x32xf32>
    %154 = arith.addf %152, %153 : vector<8x32xf32>
    %155 = math.tanh %154 : vector<8x32xf32>
    %156 = arith.mulf %151, %155 : vector<8x32xf32>
    %157 = vector.extract_strided_slice %57 {offsets = [48, 0], sizes = [8, 128], strides = [1, 1]} : vector<160x128xf32> to vector<8x128xf32>
    %cst_39 = arith.constant dense<0.000000e+00> : vector<8x128xf32>
    %158 = tpu.matmul %156, %58, %cst_39 {dimension_numbers = #tpu.dot_dimension_numbers<[1], [0], [0], [1], [0, 0, 1, 1], [], []>} : vector<8x32xf32>, vector<32x128xf32>, vector<8x128xf32> -> vector<8x128xf32>
    %159 = arith.addf %157, %158 : vector<8x128xf32>
    %160 = math.tanh %159 : vector<8x128xf32>
    %161 = arith.mulf %160, %61 : vector<8x128xf32>
    %162 = arith.addf %161, %64 : vector<8x128xf32>
    %163 = vector.extract_strided_slice %162 {offsets = [0, 0], sizes = [8, 32], strides = [1, 1]} : vector<8x128xf32> to vector<8x32xf32>
    %164 = vector.extract_strided_slice %162 {offsets = [0, 32], sizes = [8, 32], strides = [1, 1]} : vector<8x128xf32> to vector<8x32xf32>
    %165 = vector.extract_strided_slice %162 {offsets = [0, 64], sizes = [8, 32], strides = [1, 1]} : vector<8x128xf32> to vector<8x32xf32>
    %166 = vector.extract_strided_slice %162 {offsets = [0, 96], sizes = [8, 32], strides = [1, 1]} : vector<8x128xf32> to vector<8x32xf32>
    %167 = arith.mulf %164, %154 : vector<8x32xf32>
    %168 = arith.mulf %163, %165 : vector<8x32xf32>
    %169 = arith.addf %167, %168 : vector<8x32xf32>
    %170 = math.tanh %169 : vector<8x32xf32>
    %171 = arith.mulf %166, %170 : vector<8x32xf32>
    %172 = vector.extract_strided_slice %57 {offsets = [56, 0], sizes = [8, 128], strides = [1, 1]} : vector<160x128xf32> to vector<8x128xf32>
    %cst_40 = arith.constant dense<0.000000e+00> : vector<8x128xf32>
    %173 = tpu.matmul %171, %58, %cst_40 {dimension_numbers = #tpu.dot_dimension_numbers<[1], [0], [0], [1], [0, 0, 1, 1], [], []>} : vector<8x32xf32>, vector<32x128xf32>, vector<8x128xf32> -> vector<8x128xf32>
    %174 = arith.addf %172, %173 : vector<8x128xf32>
    %175 = math.tanh %174 : vector<8x128xf32>
    %176 = arith.mulf %175, %61 : vector<8x128xf32>
    %177 = arith.addf %176, %64 : vector<8x128xf32>
    %178 = vector.extract_strided_slice %177 {offsets = [0, 0], sizes = [8, 32], strides = [1, 1]} : vector<8x128xf32> to vector<8x32xf32>
    %179 = vector.extract_strided_slice %177 {offsets = [0, 32], sizes = [8, 32], strides = [1, 1]} : vector<8x128xf32> to vector<8x32xf32>
    %180 = vector.extract_strided_slice %177 {offsets = [0, 64], sizes = [8, 32], strides = [1, 1]} : vector<8x128xf32> to vector<8x32xf32>
    %181 = vector.extract_strided_slice %177 {offsets = [0, 96], sizes = [8, 32], strides = [1, 1]} : vector<8x128xf32> to vector<8x32xf32>
    %182 = arith.mulf %179, %169 : vector<8x32xf32>
    %183 = arith.mulf %178, %180 : vector<8x32xf32>
    %184 = arith.addf %182, %183 : vector<8x32xf32>
    %185 = math.tanh %184 : vector<8x32xf32>
    %186 = arith.mulf %181, %185 : vector<8x32xf32>
    %187 = vector.extract_strided_slice %57 {offsets = [64, 0], sizes = [8, 128], strides = [1, 1]} : vector<160x128xf32> to vector<8x128xf32>
    %cst_41 = arith.constant dense<0.000000e+00> : vector<8x128xf32>
    %188 = tpu.matmul %186, %58, %cst_41 {dimension_numbers = #tpu.dot_dimension_numbers<[1], [0], [0], [1], [0, 0, 1, 1], [], []>} : vector<8x32xf32>, vector<32x128xf32>, vector<8x128xf32> -> vector<8x128xf32>
    %189 = arith.addf %187, %188 : vector<8x128xf32>
    %190 = math.tanh %189 : vector<8x128xf32>
    %191 = arith.mulf %190, %61 : vector<8x128xf32>
    %192 = arith.addf %191, %64 : vector<8x128xf32>
    %193 = vector.extract_strided_slice %192 {offsets = [0, 0], sizes = [8, 32], strides = [1, 1]} : vector<8x128xf32> to vector<8x32xf32>
    %194 = vector.extract_strided_slice %192 {offsets = [0, 32], sizes = [8, 32], strides = [1, 1]} : vector<8x128xf32> to vector<8x32xf32>
    %195 = vector.extract_strided_slice %192 {offsets = [0, 64], sizes = [8, 32], strides = [1, 1]} : vector<8x128xf32> to vector<8x32xf32>
    %196 = vector.extract_strided_slice %192 {offsets = [0, 96], sizes = [8, 32], strides = [1, 1]} : vector<8x128xf32> to vector<8x32xf32>
    %197 = arith.mulf %194, %184 : vector<8x32xf32>
    %198 = arith.mulf %193, %195 : vector<8x32xf32>
    %199 = arith.addf %197, %198 : vector<8x32xf32>
    %200 = math.tanh %199 : vector<8x32xf32>
    %201 = arith.mulf %196, %200 : vector<8x32xf32>
    %202 = vector.extract_strided_slice %57 {offsets = [72, 0], sizes = [8, 128], strides = [1, 1]} : vector<160x128xf32> to vector<8x128xf32>
    %cst_42 = arith.constant dense<0.000000e+00> : vector<8x128xf32>
    %203 = tpu.matmul %201, %58, %cst_42 {dimension_numbers = #tpu.dot_dimension_numbers<[1], [0], [0], [1], [0, 0, 1, 1], [], []>} : vector<8x32xf32>, vector<32x128xf32>, vector<8x128xf32> -> vector<8x128xf32>
    %204 = arith.addf %202, %203 : vector<8x128xf32>
    %205 = math.tanh %204 : vector<8x128xf32>
    %206 = arith.mulf %205, %61 : vector<8x128xf32>
    %207 = arith.addf %206, %64 : vector<8x128xf32>
    %208 = vector.extract_strided_slice %207 {offsets = [0, 0], sizes = [8, 32], strides = [1, 1]} : vector<8x128xf32> to vector<8x32xf32>
    %209 = vector.extract_strided_slice %207 {offsets = [0, 32], sizes = [8, 32], strides = [1, 1]} : vector<8x128xf32> to vector<8x32xf32>
    %210 = vector.extract_strided_slice %207 {offsets = [0, 64], sizes = [8, 32], strides = [1, 1]} : vector<8x128xf32> to vector<8x32xf32>
    %211 = vector.extract_strided_slice %207 {offsets = [0, 96], sizes = [8, 32], strides = [1, 1]} : vector<8x128xf32> to vector<8x32xf32>
    %212 = arith.mulf %209, %199 : vector<8x32xf32>
    %213 = arith.mulf %208, %210 : vector<8x32xf32>
    %214 = arith.addf %212, %213 : vector<8x32xf32>
    %215 = math.tanh %214 : vector<8x32xf32>
    %216 = arith.mulf %211, %215 : vector<8x32xf32>
    %217 = vector.extract_strided_slice %57 {offsets = [80, 0], sizes = [8, 128], strides = [1, 1]} : vector<160x128xf32> to vector<8x128xf32>
    %cst_43 = arith.constant dense<0.000000e+00> : vector<8x128xf32>
    %218 = tpu.matmul %216, %58, %cst_43 {dimension_numbers = #tpu.dot_dimension_numbers<[1], [0], [0], [1], [0, 0, 1, 1], [], []>} : vector<8x32xf32>, vector<32x128xf32>, vector<8x128xf32> -> vector<8x128xf32>
    %219 = arith.addf %217, %218 : vector<8x128xf32>
    %220 = math.tanh %219 : vector<8x128xf32>
    %221 = arith.mulf %220, %61 : vector<8x128xf32>
    %222 = arith.addf %221, %64 : vector<8x128xf32>
    %223 = vector.extract_strided_slice %222 {offsets = [0, 0], sizes = [8, 32], strides = [1, 1]} : vector<8x128xf32> to vector<8x32xf32>
    %224 = vector.extract_strided_slice %222 {offsets = [0, 32], sizes = [8, 32], strides = [1, 1]} : vector<8x128xf32> to vector<8x32xf32>
    %225 = vector.extract_strided_slice %222 {offsets = [0, 64], sizes = [8, 32], strides = [1, 1]} : vector<8x128xf32> to vector<8x32xf32>
    %226 = vector.extract_strided_slice %222 {offsets = [0, 96], sizes = [8, 32], strides = [1, 1]} : vector<8x128xf32> to vector<8x32xf32>
    %227 = arith.mulf %224, %214 : vector<8x32xf32>
    %228 = arith.mulf %223, %225 : vector<8x32xf32>
    %229 = arith.addf %227, %228 : vector<8x32xf32>
    %230 = math.tanh %229 : vector<8x32xf32>
    %231 = arith.mulf %226, %230 : vector<8x32xf32>
    %232 = vector.extract_strided_slice %57 {offsets = [88, 0], sizes = [8, 128], strides = [1, 1]} : vector<160x128xf32> to vector<8x128xf32>
    %cst_44 = arith.constant dense<0.000000e+00> : vector<8x128xf32>
    %233 = tpu.matmul %231, %58, %cst_44 {dimension_numbers = #tpu.dot_dimension_numbers<[1], [0], [0], [1], [0, 0, 1, 1], [], []>} : vector<8x32xf32>, vector<32x128xf32>, vector<8x128xf32> -> vector<8x128xf32>
    %234 = arith.addf %232, %233 : vector<8x128xf32>
    %235 = math.tanh %234 : vector<8x128xf32>
    %236 = arith.mulf %235, %61 : vector<8x128xf32>
    %237 = arith.addf %236, %64 : vector<8x128xf32>
    %238 = vector.extract_strided_slice %237 {offsets = [0, 0], sizes = [8, 32], strides = [1, 1]} : vector<8x128xf32> to vector<8x32xf32>
    %239 = vector.extract_strided_slice %237 {offsets = [0, 32], sizes = [8, 32], strides = [1, 1]} : vector<8x128xf32> to vector<8x32xf32>
    %240 = vector.extract_strided_slice %237 {offsets = [0, 64], sizes = [8, 32], strides = [1, 1]} : vector<8x128xf32> to vector<8x32xf32>
    %241 = vector.extract_strided_slice %237 {offsets = [0, 96], sizes = [8, 32], strides = [1, 1]} : vector<8x128xf32> to vector<8x32xf32>
    %242 = arith.mulf %239, %229 : vector<8x32xf32>
    %243 = arith.mulf %238, %240 : vector<8x32xf32>
    %244 = arith.addf %242, %243 : vector<8x32xf32>
    %245 = math.tanh %244 : vector<8x32xf32>
    %246 = arith.mulf %241, %245 : vector<8x32xf32>
    %247 = vector.extract_strided_slice %57 {offsets = [96, 0], sizes = [8, 128], strides = [1, 1]} : vector<160x128xf32> to vector<8x128xf32>
    %cst_45 = arith.constant dense<0.000000e+00> : vector<8x128xf32>
    %248 = tpu.matmul %246, %58, %cst_45 {dimension_numbers = #tpu.dot_dimension_numbers<[1], [0], [0], [1], [0, 0, 1, 1], [], []>} : vector<8x32xf32>, vector<32x128xf32>, vector<8x128xf32> -> vector<8x128xf32>
    %249 = arith.addf %247, %248 : vector<8x128xf32>
    %250 = math.tanh %249 : vector<8x128xf32>
    %251 = arith.mulf %250, %61 : vector<8x128xf32>
    %252 = arith.addf %251, %64 : vector<8x128xf32>
    %253 = vector.extract_strided_slice %252 {offsets = [0, 0], sizes = [8, 32], strides = [1, 1]} : vector<8x128xf32> to vector<8x32xf32>
    %254 = vector.extract_strided_slice %252 {offsets = [0, 32], sizes = [8, 32], strides = [1, 1]} : vector<8x128xf32> to vector<8x32xf32>
    %255 = vector.extract_strided_slice %252 {offsets = [0, 64], sizes = [8, 32], strides = [1, 1]} : vector<8x128xf32> to vector<8x32xf32>
    %256 = vector.extract_strided_slice %252 {offsets = [0, 96], sizes = [8, 32], strides = [1, 1]} : vector<8x128xf32> to vector<8x32xf32>
    %257 = arith.mulf %254, %244 : vector<8x32xf32>
    %258 = arith.mulf %253, %255 : vector<8x32xf32>
    %259 = arith.addf %257, %258 : vector<8x32xf32>
    %260 = math.tanh %259 : vector<8x32xf32>
    %261 = arith.mulf %256, %260 : vector<8x32xf32>
    %262 = vector.extract_strided_slice %57 {offsets = [104, 0], sizes = [8, 128], strides = [1, 1]} : vector<160x128xf32> to vector<8x128xf32>
    %cst_46 = arith.constant dense<0.000000e+00> : vector<8x128xf32>
    %263 = tpu.matmul %261, %58, %cst_46 {dimension_numbers = #tpu.dot_dimension_numbers<[1], [0], [0], [1], [0, 0, 1, 1], [], []>} : vector<8x32xf32>, vector<32x128xf32>, vector<8x128xf32> -> vector<8x128xf32>
    %264 = arith.addf %262, %263 : vector<8x128xf32>
    %265 = math.tanh %264 : vector<8x128xf32>
    %266 = arith.mulf %265, %61 : vector<8x128xf32>
    %267 = arith.addf %266, %64 : vector<8x128xf32>
    %268 = vector.extract_strided_slice %267 {offsets = [0, 0], sizes = [8, 32], strides = [1, 1]} : vector<8x128xf32> to vector<8x32xf32>
    %269 = vector.extract_strided_slice %267 {offsets = [0, 32], sizes = [8, 32], strides = [1, 1]} : vector<8x128xf32> to vector<8x32xf32>
    %270 = vector.extract_strided_slice %267 {offsets = [0, 64], sizes = [8, 32], strides = [1, 1]} : vector<8x128xf32> to vector<8x32xf32>
    %271 = vector.extract_strided_slice %267 {offsets = [0, 96], sizes = [8, 32], strides = [1, 1]} : vector<8x128xf32> to vector<8x32xf32>
    %272 = arith.mulf %269, %259 : vector<8x32xf32>
    %273 = arith.mulf %268, %270 : vector<8x32xf32>
    %274 = arith.addf %272, %273 : vector<8x32xf32>
    %275 = math.tanh %274 : vector<8x32xf32>
    %276 = arith.mulf %271, %275 : vector<8x32xf32>
    %277 = vector.extract_strided_slice %57 {offsets = [112, 0], sizes = [8, 128], strides = [1, 1]} : vector<160x128xf32> to vector<8x128xf32>
    %cst_47 = arith.constant dense<0.000000e+00> : vector<8x128xf32>
    %278 = tpu.matmul %276, %58, %cst_47 {dimension_numbers = #tpu.dot_dimension_numbers<[1], [0], [0], [1], [0, 0, 1, 1], [], []>} : vector<8x32xf32>, vector<32x128xf32>, vector<8x128xf32> -> vector<8x128xf32>
    %279 = arith.addf %277, %278 : vector<8x128xf32>
    %280 = math.tanh %279 : vector<8x128xf32>
    %281 = arith.mulf %280, %61 : vector<8x128xf32>
    %282 = arith.addf %281, %64 : vector<8x128xf32>
    %283 = vector.extract_strided_slice %282 {offsets = [0, 0], sizes = [8, 32], strides = [1, 1]} : vector<8x128xf32> to vector<8x32xf32>
    %284 = vector.extract_strided_slice %282 {offsets = [0, 32], sizes = [8, 32], strides = [1, 1]} : vector<8x128xf32> to vector<8x32xf32>
    %285 = vector.extract_strided_slice %282 {offsets = [0, 64], sizes = [8, 32], strides = [1, 1]} : vector<8x128xf32> to vector<8x32xf32>
    %286 = vector.extract_strided_slice %282 {offsets = [0, 96], sizes = [8, 32], strides = [1, 1]} : vector<8x128xf32> to vector<8x32xf32>
    %287 = arith.mulf %284, %274 : vector<8x32xf32>
    %288 = arith.mulf %283, %285 : vector<8x32xf32>
    %289 = arith.addf %287, %288 : vector<8x32xf32>
    %290 = math.tanh %289 : vector<8x32xf32>
    %291 = arith.mulf %286, %290 : vector<8x32xf32>
    %292 = vector.extract_strided_slice %57 {offsets = [120, 0], sizes = [8, 128], strides = [1, 1]} : vector<160x128xf32> to vector<8x128xf32>
    %cst_48 = arith.constant dense<0.000000e+00> : vector<8x128xf32>
    %293 = tpu.matmul %291, %58, %cst_48 {dimension_numbers = #tpu.dot_dimension_numbers<[1], [0], [0], [1], [0, 0, 1, 1], [], []>} : vector<8x32xf32>, vector<32x128xf32>, vector<8x128xf32> -> vector<8x128xf32>
    %294 = arith.addf %292, %293 : vector<8x128xf32>
    %295 = math.tanh %294 : vector<8x128xf32>
    %296 = arith.mulf %295, %61 : vector<8x128xf32>
    %297 = arith.addf %296, %64 : vector<8x128xf32>
    %298 = vector.extract_strided_slice %297 {offsets = [0, 0], sizes = [8, 32], strides = [1, 1]} : vector<8x128xf32> to vector<8x32xf32>
    %299 = vector.extract_strided_slice %297 {offsets = [0, 32], sizes = [8, 32], strides = [1, 1]} : vector<8x128xf32> to vector<8x32xf32>
    %300 = vector.extract_strided_slice %297 {offsets = [0, 64], sizes = [8, 32], strides = [1, 1]} : vector<8x128xf32> to vector<8x32xf32>
    %301 = vector.extract_strided_slice %297 {offsets = [0, 96], sizes = [8, 32], strides = [1, 1]} : vector<8x128xf32> to vector<8x32xf32>
    %302 = arith.mulf %299, %289 : vector<8x32xf32>
    %303 = arith.mulf %298, %300 : vector<8x32xf32>
    %304 = arith.addf %302, %303 : vector<8x32xf32>
    %305 = math.tanh %304 : vector<8x32xf32>
    %306 = arith.mulf %301, %305 : vector<8x32xf32>
    %307 = vector.extract_strided_slice %57 {offsets = [128, 0], sizes = [8, 128], strides = [1, 1]} : vector<160x128xf32> to vector<8x128xf32>
    %cst_49 = arith.constant dense<0.000000e+00> : vector<8x128xf32>
    %308 = tpu.matmul %306, %58, %cst_49 {dimension_numbers = #tpu.dot_dimension_numbers<[1], [0], [0], [1], [0, 0, 1, 1], [], []>} : vector<8x32xf32>, vector<32x128xf32>, vector<8x128xf32> -> vector<8x128xf32>
    %309 = arith.addf %307, %308 : vector<8x128xf32>
    %310 = math.tanh %309 : vector<8x128xf32>
    %311 = arith.mulf %310, %61 : vector<8x128xf32>
    %312 = arith.addf %311, %64 : vector<8x128xf32>
    %313 = vector.extract_strided_slice %312 {offsets = [0, 0], sizes = [8, 32], strides = [1, 1]} : vector<8x128xf32> to vector<8x32xf32>
    %314 = vector.extract_strided_slice %312 {offsets = [0, 32], sizes = [8, 32], strides = [1, 1]} : vector<8x128xf32> to vector<8x32xf32>
    %315 = vector.extract_strided_slice %312 {offsets = [0, 64], sizes = [8, 32], strides = [1, 1]} : vector<8x128xf32> to vector<8x32xf32>
    %316 = vector.extract_strided_slice %312 {offsets = [0, 96], sizes = [8, 32], strides = [1, 1]} : vector<8x128xf32> to vector<8x32xf32>
    %317 = arith.mulf %314, %304 : vector<8x32xf32>
    %318 = arith.mulf %313, %315 : vector<8x32xf32>
    %319 = arith.addf %317, %318 : vector<8x32xf32>
    %320 = math.tanh %319 : vector<8x32xf32>
    %321 = arith.mulf %316, %320 : vector<8x32xf32>
    %322 = vector.extract_strided_slice %57 {offsets = [136, 0], sizes = [8, 128], strides = [1, 1]} : vector<160x128xf32> to vector<8x128xf32>
    %cst_50 = arith.constant dense<0.000000e+00> : vector<8x128xf32>
    %323 = tpu.matmul %321, %58, %cst_50 {dimension_numbers = #tpu.dot_dimension_numbers<[1], [0], [0], [1], [0, 0, 1, 1], [], []>} : vector<8x32xf32>, vector<32x128xf32>, vector<8x128xf32> -> vector<8x128xf32>
    %324 = arith.addf %322, %323 : vector<8x128xf32>
    %325 = math.tanh %324 : vector<8x128xf32>
    %326 = arith.mulf %325, %61 : vector<8x128xf32>
    %327 = arith.addf %326, %64 : vector<8x128xf32>
    %328 = vector.extract_strided_slice %327 {offsets = [0, 0], sizes = [8, 32], strides = [1, 1]} : vector<8x128xf32> to vector<8x32xf32>
    %329 = vector.extract_strided_slice %327 {offsets = [0, 32], sizes = [8, 32], strides = [1, 1]} : vector<8x128xf32> to vector<8x32xf32>
    %330 = vector.extract_strided_slice %327 {offsets = [0, 64], sizes = [8, 32], strides = [1, 1]} : vector<8x128xf32> to vector<8x32xf32>
    %331 = vector.extract_strided_slice %327 {offsets = [0, 96], sizes = [8, 32], strides = [1, 1]} : vector<8x128xf32> to vector<8x32xf32>
    %332 = arith.mulf %329, %319 : vector<8x32xf32>
    %333 = arith.mulf %328, %330 : vector<8x32xf32>
    %334 = arith.addf %332, %333 : vector<8x32xf32>
    %335 = math.tanh %334 : vector<8x32xf32>
    %336 = arith.mulf %331, %335 : vector<8x32xf32>
    %337 = vector.extract_strided_slice %57 {offsets = [144, 0], sizes = [8, 128], strides = [1, 1]} : vector<160x128xf32> to vector<8x128xf32>
    %cst_51 = arith.constant dense<0.000000e+00> : vector<8x128xf32>
    %338 = tpu.matmul %336, %58, %cst_51 {dimension_numbers = #tpu.dot_dimension_numbers<[1], [0], [0], [1], [0, 0, 1, 1], [], []>} : vector<8x32xf32>, vector<32x128xf32>, vector<8x128xf32> -> vector<8x128xf32>
    %339 = arith.addf %337, %338 : vector<8x128xf32>
    %340 = math.tanh %339 : vector<8x128xf32>
    %341 = arith.mulf %340, %61 : vector<8x128xf32>
    %342 = arith.addf %341, %64 : vector<8x128xf32>
    %343 = vector.extract_strided_slice %342 {offsets = [0, 0], sizes = [8, 32], strides = [1, 1]} : vector<8x128xf32> to vector<8x32xf32>
    %344 = vector.extract_strided_slice %342 {offsets = [0, 32], sizes = [8, 32], strides = [1, 1]} : vector<8x128xf32> to vector<8x32xf32>
    %345 = vector.extract_strided_slice %342 {offsets = [0, 64], sizes = [8, 32], strides = [1, 1]} : vector<8x128xf32> to vector<8x32xf32>
    %346 = vector.extract_strided_slice %342 {offsets = [0, 96], sizes = [8, 32], strides = [1, 1]} : vector<8x128xf32> to vector<8x32xf32>
    %347 = arith.mulf %344, %334 : vector<8x32xf32>
    %348 = arith.mulf %343, %345 : vector<8x32xf32>
    %349 = arith.addf %347, %348 : vector<8x32xf32>
    %350 = math.tanh %349 : vector<8x32xf32>
    %351 = arith.mulf %346, %350 : vector<8x32xf32>
    %352 = vector.extract_strided_slice %57 {offsets = [152, 0], sizes = [8, 128], strides = [1, 1]} : vector<160x128xf32> to vector<8x128xf32>
    %cst_52 = arith.constant dense<0.000000e+00> : vector<8x128xf32>
    %353 = tpu.matmul %351, %58, %cst_52 {dimension_numbers = #tpu.dot_dimension_numbers<[1], [0], [0], [1], [0, 0, 1, 1], [], []>} : vector<8x32xf32>, vector<32x128xf32>, vector<8x128xf32> -> vector<8x128xf32>
    %354 = arith.addf %352, %353 : vector<8x128xf32>
    %355 = math.tanh %354 : vector<8x128xf32>
    %356 = arith.mulf %355, %61 : vector<8x128xf32>
    %357 = arith.addf %356, %64 : vector<8x128xf32>
    %358 = vector.extract_strided_slice %357 {offsets = [0, 0], sizes = [8, 32], strides = [1, 1]} : vector<8x128xf32> to vector<8x32xf32>
    %359 = vector.extract_strided_slice %357 {offsets = [0, 32], sizes = [8, 32], strides = [1, 1]} : vector<8x128xf32> to vector<8x32xf32>
    %360 = vector.extract_strided_slice %357 {offsets = [0, 64], sizes = [8, 32], strides = [1, 1]} : vector<8x128xf32> to vector<8x32xf32>
    %361 = vector.extract_strided_slice %357 {offsets = [0, 96], sizes = [8, 32], strides = [1, 1]} : vector<8x128xf32> to vector<8x32xf32>
    %362 = arith.mulf %359, %349 : vector<8x32xf32>
    %363 = arith.mulf %358, %360 : vector<8x32xf32>
    %364 = arith.addf %362, %363 : vector<8x32xf32>
    %365 = math.tanh %364 : vector<8x32xf32>
    %366 = arith.mulf %361, %365 : vector<8x32xf32>
    %c424 = arith.constant 424 : index
    %c0_53 = arith.constant 0 : index
    %367 = vector.load %arg2[%c424, %c0_53] : memref<456x128xf32, #tpu.memory_space<vmem>>, vector<32x128xf32>
    %cst_54 = arith.constant dense<0.000000e+00> : vector<8x128xf32>
    %368 = tpu.matmul %366, %367, %cst_54 {dimension_numbers = #tpu.dot_dimension_numbers<[1], [0], [0], [1], [0, 0, 1, 1], [], []>} : vector<8x32xf32>, vector<32x128xf32>, vector<8x128xf32> -> vector<8x128xf32>
    %369 = arith.addf %53, %368 : vector<8x128xf32>
    %c132 = arith.constant 132 : index
    %c0_55 = arith.constant 0 : index
    %370 = vector.load %arg2[%c132, %c0_55] : memref<456x128xf32, #tpu.memory_space<vmem>>, vector<1x128xf32>
    %371 = vector.broadcast %370 : vector<1x128xf32> to vector<8x128xf32>
    %372 = arith.addf %369, %371 : vector<8x128xf32>
    %c0_56 = arith.constant 0 : index
    %c0_57 = arith.constant 0 : index
    %373 = vector.load %arg3[%c0_56, %c0_57] : memref<8x128xf32, #tpu.memory_space<vmem>>, vector<8x128xf32>
    tpu.vector_store %arg3[%c0_56, %c0_57], %372 {strides = array<i32>} : memref<8x128xf32, #tpu.memory_space<vmem>>, vector<8x128xf32>,
    return
  }
}

</mosaic_0001>

<bundles_post_ra>
// kernel: cnn_lstm_forward.1
= control target key start
LH: loop header
LB: loop body
LE: loop exit
PB: predicated region body
PF: predicated region fallthrough
CT: control target
= control target key end

     0   :  { %s4312_s14 = smov 96   ;;  %s4314_s21 = smov 120   ;;  %vm361_vm0 = vcmask 64512   ;;  %vm4316_vm1 = vmmov 0   ;;  %vm679_vm2 = vcmask 261120   ;;  %vm3257_vm3 = vcmask 785408   ;;  %s5047_s2 = inlined_call_operand.vmem [shape: f32[456,128], index: 2, kind: input, shape index: {}]   ;;  %s5048_s0 = inlined_call_operand.vmem [shape: f32[96,128], index: 0, kind: input, shape index: {}]   ;;  %s5049_s1 = inlined_call_operand.vmem [shape: f32[160,128], index: 1, kind: input, shape index: {}]   ;;  %s5050_s3 = inlined_call_operand.vmem [shape: f32[8,128], index: 3, kind: output, shape index: {}]  }
   0x1   :  { %v14_v0 = vld [vmem:[%s5047_s2] sm:$0xff]  ;;  %v15_v1 = vld [vmem:[%s5047_s2 + $0x8] sm:$0xff]  ;;  %v16_v2 = vld [vmem:[%s5047_s2 + $0x10] sm:$0xff]  ;;  %s4318_s18 = smov 64   ;;  %s4319_s19 = smov 32  }
   0x2   :  { %v4014_v3 = vpack.c.bf16 %v15_v1, %v14_v0  ;;  %v17_v4 = vld [vmem:[%s5047_s2 + $0x18] sm:$0xff]  ;;  %v18_v6 = vld [vmem:[%s5047_s2 + $0x20] sm:$0xff]  ;;  %v19_v7 = vld [vmem:[%s5047_s2 + $0x28] sm:$0xff] }
   0x3   :  { %v4018_v5 = vpack.c.bf16 %v17_v4, %v16_v2  ;;  %v4022_v8 = vpack.c.bf16 %v19_v7, %v18_v6  ;;  %v30_v9 = vld [vmem:[%s5048_s0] sm:$0xff]  ;;  %v20_v10 = vld [vmem:[%s5047_s2 + $0x30] sm:$0xff]  ;;  %v21_v11 = vld [vmem:[%s5047_s2 + $0x38] sm:$0xff] }
   0x4   :  { %4015 = vmatprep.subr.bf16.mxu0 %v4014_v3  ;;  %3638 = vmatprep.mubr.f32.mxu0 %v30_v9  ;;  %v4026_v12 = vpack.c.bf16 %v21_v11, %v20_v10  ;;  %v22_v13 = vld [vmem:[%s5047_s2 + $0x40] sm:$0xff]  ;;  %v23_v14 = vld [vmem:[%s5047_s2 + $0x48] sm:$0xff]  ;;  %v24_v16 = vld [vmem:[%s5047_s2 + $0x50] sm:$0xff] }
   0x5   :  { %4017 = vmatpush3.bf16.msra.mxu0 %v4014_v3  ;;  %v4030_v15 = vpack.c.bf16 %v23_v14, %v22_v13  ;;  %v25_v17 = vld [vmem:[%s5047_s2 + $0x58] sm:$0xff]  ;;  %v26_v19 = vld [vmem:[%s5047_s2 + $0x60] sm:$0xff]  ;;  %v27_v20 = vld [vmem:[%s5047_s2 + $0x68] sm:$0xff] }
   0x6   :  { %4019 = vmatprep.subr.bf16.mxu0 %v4018_v5  ;;  %v4034_v18 = vpack.c.bf16 %v25_v17, %v24_v16  ;;  %v4038_v21 = vpack.c.bf16 %v27_v20, %v26_v19  ;;  %v28_v22 = vld [vmem:[%s5047_s2 + $0x70] sm:$0xff]  ;;  %v29_v23 = vld [vmem:[%s5047_s2 + $0x78] sm:$0xff]  ;;  %v31_v25 = vld [vmem:[%s5048_s0 + $0x8] sm:$0xff] }
   0x7   :  { %v4042_v24 = vpack.c.bf16 %v29_v23, %v28_v22  ;;  %v32_v26 = vld [vmem:[%s5048_s0 + $0x10] sm:$0xff]  ;;  %v33_v27 = vld [vmem:[%s5048_s0 + $0x18] sm:$0xff]  ;;  %v34_v28 = vld [vmem:[%s5048_s0 + $0x20] sm:$0xff] }
   0x8   :  { %v35_v29 = vld [vmem:[%s5048_s0 + $0x28] sm:$0xff]  ;;  %v36_v30 = vld [vmem:[%s5048_s0 + $0x30] sm:$0xff]  ;;  %v37_v31 = vld [vmem:[%s5048_s0 + $0x38] sm:$0xff] }
   0x9   :  { %4021 = vmatpush3.bf16.msra.mxu0 %v4018_v5  ;;  %v38_v32 = vld [vmem:[%s5048_s0 + $0x40] sm:$0xff]  ;;  %v39_v33 = vld [vmem:[%s5048_s0 + $0x48] sm:$0xff]  ;;  %v40_v34 = vld [vmem:[%s5048_s0 + $0x50] sm:$0xff] }
   0xa   :  { %4023 = vmatprep.subr.bf16.mxu0 %v4022_v8  ;;  %v41_v35 = vld [vmem:[%s5048_s0 + $0x58] sm:$0xff]  ;;  %s4313_s0 = smov 112   ;;  %v360_v13 = vld [vmem:[%s5047_s2 + $0x90] sm:$0xff]  ;;  %v359_v22 = vld [vmem:[%s5047_s2 + $0x88] sm:$0xff] }
   0xd   :  { %4025 = vmatpush3.bf16.msra.mxu0 %v4022_v8 }
   0xe   :  { %4027 = vmatprep.subr.bf16.mxu0 %v4026_v12 }
  0x11   :  { %4029 = vmatpush3.bf16.msra.mxu0 %v4026_v12 }
  0x12   :  { %4031 = vmatprep.subr.bf16.mxu0 %v4030_v15 }
  0x15   :  { %4033 = vmatpush3.bf16.msra.mxu0 %v4030_v15 }
  0x16   :  { %4035 = vmatprep.subr.bf16.mxu0 %v4034_v18 }
  0x19   :  { %4037 = vmatpush3.bf16.msra.mxu0 %v4034_v18 }
  0x1a   :  { %4039 = vmatprep.subr.bf16.mxu0 %v4038_v21 }
  0x1d   :  { %4041 = vmatpush3.bf16.msra.mxu0 %v4038_v21  ;;  %v459_v21 = vld [vmem:[%s5047_s2 + $0x98] sm:$0xff] }
  0x1e   :  { %4043 = vmatprep.subr.bf16.mxu0 %v4042_v24  ;;  %3664 = vmatprep.subr.mxu1 %v459_v21 }
  0x1f   :  { %3665 = vmatpush3.msra.mxu1 %v459_v21 }
  0x20   :  { %3672 = vmatprep.subr.mxu1 %v359_v22 }
  0x21   :  { %4045 = vmatpush3.bf16.msra.mxu0 %v4042_v24 }
  0x22   :  { %3656 = vmatprep.subr.mxu0 %v360_v13 }
  0x24   :  { %3639 = vmatmul.mubr.f32.vlgmr.msra.gmra.mrb[0].mxu0 %v31_v25 }
  0x25   :  { %3641 = vmatprep.mubr.f32.mxu0 %v32_v26  ;;  %3657 = vmatpush3.msra.mxu0 %v360_v13 }
  0x28   :  { %3642 = vmatmul.mubr.f32.gmra.mrb[2].mxu0 %v33_v27 }
  0x29   :  { %3644 = vmatprep.mubr.f32.mxu0 %v34_v28 }
  0x2c   :  { %3645 = vmatmul.mubr.f32.gmra.mrb[4].mxu0 %v35_v29 }
  0x2d   :  { %3647 = vmatprep.mubr.f32.mxu0 %v36_v30 }
  0x30   :  { %3648 = vmatmul.mubr.f32.gmra.mrb[6].mxu0 %v37_v31 }
  0x31   :  { %3650 = vmatprep.mubr.f32.mxu0 %v38_v32 }
  0x34   :  { %3651 = vmatmul.mubr.f32.gmra.mrb[8].mxu0 %v39_v33 }
  0x35   :  { %3653 = vmatprep.mubr.f32.mxu0 %v40_v34 }
  0x38   :  { %3654 = vmatmul.mubr.f32.gmra.mrb[10].mxu0 %v41_v35 }
  0xf7   :  { %v3640_v36 = vpop.f32.mrb[0].mxu0 }
  0xf8   :  { %v108_v37 = vpop.f32.mrb[1].mxu0  ;;  %v168_v54 = vmax.f32 %v3640_v36, 0.0 }
  0xf9   :  { %v167_v52 = vmax.f32 %v108_v37, 0.0 }
  0xfb   :  { %v4424_v38 = vpop.f32.mrb[2].mxu0 }
  0xfc   :  { %v4426_v39 = vpop.f32.mrb[3].mxu0  ;;  %v170_v58 = vmax.f32 %v4424_v38, 0.0 }
  0xfd   :  { %v169_v56 = vmax.f32 %v4426_v39, 0.0  ;;  %v4315_v39 = vmov 0.0|0.0  }
  0xfe   :  { %4070 = vmatprep.subr.bf16.mxu0 %v4315_v39 }
  0xff   :  { %v3646_v40 = vpop.f32.mrb[4].mxu0 }
 0x100   :  { %v128_v41 = vpop.f32.mrb[5].mxu0  ;;  %v172_v55 = vmax.f32 %v3646_v40, 0.0 }
 0x101   :  { %v171_v53 = vmax.f32 %v128_v41, 0.0 }
 0x103   :  { %v4428_v42 = vpop.f32.mrb[6].mxu0 }
 0x104   :  { %v138_v43 = vpop.f32.mrb[7].mxu0  ;;  %v174_v59 = vmax.f32 %v4428_v42, 0.0 }
 0x105   :  { %v173_v57 = vmax.f32 %v138_v43, 0.0 }
 0x107   :  { %v3652_v44 = vpop.f32.mrb[8].mxu0 }
 0x108   :  { %v148_v45 = vpop.f32.mrb[9].mxu0  ;;  %v176_v50 = vmax.f32 %v3652_v44, 0.0 }
 0x109   :  { %v175_v46 = vmax.f32 %v148_v45, 0.0 }
 0x10b   :  { %207 = vrot.lane.b32.xlu0 %v175_v46, %s4312_s14  ;;  %v3655_v47 = vpop.f32.mrb[10].mxu0 }
 0x10c   :  { %v178_v48 = vmax.f32 %v3655_v47, 0.0  ;;  %v158_v49 = vpop.f32.mrb[11].mxu0 }
 0x10d   :  { %v177_v51 = vmax.f32 %v158_v49, 0.0 }
 0x10e   :  { %213 = vrot.lane.b32.xlu1 %v178_v48, %s4312_s14 }
 0x10f   :  { %209 = vrot.lane.b32.xlu0 %v176_v50, %s4312_s14 }
 0x112   :  { %211 = vrot.lane.b32.xlu1 %v177_v51, %s4312_s14 }
 0x113   :  { %191 = vrot.lane.b32.xlu0 %v167_v52, %s4312_s14 }
 0x116   :  { %199 = vrot.lane.b32.xlu1 %v171_v53, %s4312_s14 }
 0x117   :  { %193 = vrot.lane.b32.xlu0 %v168_v54, %s4312_s14 }
 0x11a   :  { %201 = vrot.lane.b32.xlu1 %v172_v55, %s4312_s14 }
 0x11b   :  { %195 = vrot.lane.b32.xlu0 %v169_v56, %s4312_s14 }
 0x11e   :  { %203 = vrot.lane.b32.xlu1 %v173_v57, %s4312_s14 }
 0x11f   :  { %197 = vrot.lane.b32.xlu0 %v170_v58, %s4312_s14 }
 0x122   :  { %205 = vrot.lane.b32.xlu1 %v174_v59, %s4312_s14 }
 0x17d   :  { %v208_v60 = vpop.permute.xlu0 %207 }
 0x17e   :  { %v235_v61 = vmax.f32 %v175_v46, %v208_v60 }
 0x180   :  { %267 = vrot.lane.b32.xlu0 %v235_v61, %s4313_s0  ;;  %v214_v62 = vpop.permute.xlu1 %213 }
 0x181   :  { %v210_v63 = vpop.permute.xlu0 %209  ;;  %v238_v4 = vmax.f32 %v178_v48, %v214_v62 }
 0x182   :  { %v236_v0 = vmax.f32 %v176_v50, %v210_v63 }
 0x184   :  { %269 = vrot.lane.b32.xlu1 %v236_v0, %s4313_s0  ;;  %v212_v1 = vpop.permute.xlu1 %211 }
 0x185   :  { %v237_v2 = vmax.f32 %v177_v51, %v212_v1  ;;  %v192_v3 = vpop.permute.xlu0 %191 }
 0x186   :  { %v227_v6 = vmax.f32 %v167_v52, %v192_v3 }
 0x187   :  { %271 = vrot.lane.b32.xlu0 %v237_v2, %s4313_s0 }
 0x188   :  { %273 = vrot.lane.b32.xlu1 %v238_v4, %s4313_s0  ;;  %v200_v5 = vpop.permute.xlu1 %199 }
 0x189   :  { %v231_v7 = vmax.f32 %v171_v53, %v200_v5  ;;  %v194_v8 = vpop.permute.xlu0 %193 }
 0x18a   :  { %v228_v10 = vmax.f32 %v168_v54, %v194_v8  ;;  %v675_v8 = vld [vmem:[%s5047_s2 + $0xc0] sm:$0xff] }
 0x18b   :  { %251 = vrot.lane.b32.xlu0 %v227_v6, %s4313_s0 }
 0x18c   :  { %259 = vrot.lane.b32.xlu1 %v231_v7, %s4313_s0  ;;  %v202_v9 = vpop.permute.xlu1 %201 }
 0x18d   :  { %v232_v11 = vmax.f32 %v172_v55, %v202_v9  ;;  %v196_v12 = vpop.permute.xlu0 %195  ;;  %v676_v9 = vld [vmem:[%s5047_s2 + $0xc8] sm:$0xff] }
 0x18e   :  { %v229_v15 = vmax.f32 %v169_v56, %v196_v12  ;;  %v678_v12 = vld [vmem:[%s5047_s2 + $0xd8] sm:$0xff] }
 0x18f   :  { %253 = vrot.lane.b32.xlu0 %v228_v10, %s4313_s0 }
 0x190   :  { %261 = vrot.lane.b32.xlu1 %v232_v11, %s4313_s0  ;;  %v204_v14 = vpop.permute.xlu1 %203 }
 0x191   :  { %v233_v16 = vmax.f32 %v173_v57, %v204_v14  ;;  %v198_v17 = vpop.permute.xlu0 %197  ;;  %v4317_v14 = vmov 0.0  }
 0x192   :  { %v230_v19 = vmax.f32 %v170_v58, %v198_v17 }
 0x193   :  { %255 = vrot.lane.b32.xlu0 %v229_v15, %s4313_s0 }
 0x194   :  { %263 = vrot.lane.b32.xlu1 %v233_v16, %s4313_s0  ;;  %v206_v18 = vpop.permute.xlu1 %205 }
 0x195   :  { %v234_v20 = vmax.f32 %v174_v59, %v206_v18  ;;  %v1248_v18 = vld [vmem:[%s5047_s2 + $0x198] sm:$0xff] }
 0x197   :  { %257 = vrot.lane.b32.xlu0 %v230_v19, %s4313_s0 }
 0x198   :  { %265 = vrot.lane.b32.xlu1 %v234_v20, %s4313_s0 }
 0x1f2   :  { %v268_v23 = vpop.permute.xlu0 %267 }
 0x1f3   :  { %v295_v24 = vmax.f32 %v235_v61, %v268_v23  ;;  %v3354_v23 = vld [vmem:[%s5047_s2 + $0x80] ss:$0 sm:$0xff] }
 0x1f5   :  { %327 = vrot.lane.b32.xlu0 %v295_v24, %s4314_s21 }
 0x1f6   :  { %v270_v25 = vpop.permute.xlu1 %269 }
 0x1f7   :  { %v296_v26 = vmax.f32 %v236_v0, %v270_v25 }
 0x1f9   :  { %v272_v27 = vpop.permute.xlu0 %271  ;;  %329 = vrot.lane.b32.xlu1 %v296_v26, %s4314_s21 }
 0x1fa   :  { %v297_v28 = vmax.f32 %v237_v2, %v272_v27  ;;  %v274_v29 = vpop.permute.xlu1 %273  ;;  %v757_v27 = vld [vmem:[%s5047_s2 + $0x100] sm:$0xff] }
 0x1fb   :  { %v298_v30 = vmax.f32 %v238_v4, %v274_v29 }
 0x1fc   :  { %331 = vrot.lane.b32.xlu0 %v297_v28, %s4314_s21 }
 0x1fd   :  { %v252_v31 = vpop.permute.xlu0 %251  ;;  %333 = vrot.lane.b32.xlu1 %v298_v30, %s4314_s21 }
 0x1fe   :  { %v287_v32 = vmax.f32 %v227_v6, %v252_v31  ;;  %v260_v33 = vpop.permute.xlu1 %259 }
 0x1ff   :  { %v291_v34 = vmax.f32 %v231_v7, %v260_v33  ;;  %v759_v33 = vld [vmem:[%s5047_s2 + $0x110] sm:$0xff] }
 0x200   :  { %311 = vrot.lane.b32.xlu0 %v287_v32, %s4314_s21 }
 0x201   :  { %v254_v35 = vpop.permute.xlu0 %253  ;;  %319 = vrot.lane.b32.xlu1 %v291_v34, %s4314_s21 }
 0x202   :  { %v288_v36 = vmax.f32 %v228_v10, %v254_v35  ;;  %v262_v37 = vpop.permute.xlu1 %261  ;;  %v4047_v10 = vpack.c.bf16 %v676_v9, %v675_v8 }
 0x203   :  { %v292_v38 = vmax.f32 %v232_v11, %v262_v37  ;;  %v677_v11 = vld [vmem:[%s5047_s2 + $0xd0] sm:$0xff] }
 0x204   :  { %313 = vrot.lane.b32.xlu0 %v288_v36, %s4314_s21  ;;  %v4050_v13 = vpack.c.bf16 %v678_v12, %v677_v11 }
 0x205   :  { %v256_v40 = vpop.permute.xlu0 %255  ;;  %321 = vrot.lane.b32.xlu1 %v292_v38, %s4314_s21 }
 0x206   :  { %v289_v41 = vmax.f32 %v229_v15, %v256_v40  ;;  %v264_v42 = vpop.permute.xlu1 %263  ;;  %v1246_v15 = vld [vmem:[%s5047_s2 + $0x188] sm:$0xff] }
 0x207   :  { %v293_v43 = vmax.f32 %v233_v16, %v264_v42  ;;  %v1247_v16 = vld [vmem:[%s5047_s2 + $0x190] sm:$0xff]  ;;  %v671_v42 = vld [vmem:[%s5047_s2 + $0xa0] sm:$0xff] }
 0x208   :  { %315 = vrot.lane.b32.xlu0 %v289_v41, %s4314_s21  ;;  %v4504_v17 = vpack.c.bf16 %v1247_v16, %v1246_v15 }
 0x209   :  { %v258_v44 = vpop.permute.xlu0 %257  ;;  %323 = vrot.lane.b32.xlu1 %v293_v43, %s4314_s21 }
 0x20a   :  { %v290_v45 = vmax.f32 %v230_v19, %v258_v44  ;;  %v266_v46 = vpop.permute.xlu1 %265  ;;  %v1249_v19 = vld [vmem:[%s5047_s2 + $0x1a0] sm:$0xff] }
 0x20b   :  { %v294_v47 = vmax.f32 %v234_v20, %v266_v46  ;;  %v4514_v20 = vpack.c.bf16 %v1249_v19, %v1248_v18  ;;  %v4600_v18 = vld [vmem:[%s5047_s2 + $0x82] ss:$0 sm:$0xff] }
 0x20c   :  { %317 = vrot.lane.b32.xlu0 %v290_v45, %s4314_s21 }
 0x20d   :  { %325 = vrot.lane.b32.xlu1 %v294_v47, %s4314_s21 }
 0x267   :  { %v328_v48 = vpop.permute.xlu0 %327 }
 0x268   :  { %v355_v49 = vmax.f32 %v295_v24, %v328_v48  ;;  %v673_v48 = vld [vmem:[%s5047_s2 + $0xb0] sm:$0xff] }
 0x26a   :  { %3666 = vmatprep.mubr.msk.f32.mxu1 %vm361_vm0, %v355_v49  ;;  %v674_v49 = vld [vmem:[%s5047_s2 + $0xb8] sm:$0xff] }
 0x26b   :  { %v330_v50 = vpop.permute.xlu1 %329 }
 0x26c   :  { %v356_v51 = vmax.f32 %v296_v26, %v330_v50  ;;  %v4062_v50 = vpack.c.bf16 %v674_v49, %v673_v48 }
 0x26e   :  { %v332_v52 = vpop.permute.xlu0 %331  ;;  %3667 = vmatmul.mubr.msk.f32.vlgmr.msra.gmra.mrb[0].mxu1 %vm361_vm0, %v356_v51 }
 0x26f   :  { %v357_v53 = vmax.f32 %v297_v28, %v332_v52  ;;  %v334_v54 = vpop.permute.xlu1 %333  ;;  %3673 = vmatpush3.msra.mxu1 %v359_v22  ;;  %v758_v28 = vld [vmem:[%s5047_s2 + $0x108] sm:$0xff]  ;;  %v753_v52 = vld [vmem:[%s5047_s2 + $0xe0] sm:$0xff] }
 0x270   :  { %v358_v55 = vmax.f32 %v298_v30, %v334_v54  ;;  %4046 = vmatprep.subr.bf16.mxu1 %v4315_v39  ;;  %v4053_v31 = vpack.c.bf16 %v758_v28, %v757_v27 }
 0x271   :  { %3669 = vmatprep.mubr.msk.f32.mxu1 %vm361_vm0, %v357_v53  ;;  %v754_v53 = vld [vmem:[%s5047_s2 + $0xe8] sm:$0xff] }
 0x272   :  { %v312_v56 = vpop.permute.xlu0 %311  ;;  %3670 = vmatmul.mubr.msk.f32.gmra.mrb[2].mxu1 %vm361_vm0, %v358_v55  ;;  %v4065_v54 = vpack.c.bf16 %v754_v53, %v753_v52 }
 0x273   :  { %v347_v57 = vmax.f32 %v287_v32, %v312_v56  ;;  %v320_v58 = vpop.permute.xlu1 %319  ;;  %v755_v56 = vld [vmem:[%s5047_s2 + $0xf0] sm:$0xff] }
 0x274   :  { %v351_v59 = vmax.f32 %v291_v34, %v320_v58  ;;  %v760_v34 = vld [vmem:[%s5047_s2 + $0x118] sm:$0xff] }
 0x275   :  { %3674 = vmatprep.mubr.msk.f32.mxu1 %vm361_vm0, %v347_v57  ;;  %v756_v57 = vld [vmem:[%s5047_s2 + $0xf8] sm:$0xff] }
 0x276   :  { %v314_v60 = vpop.permute.xlu0 %313  ;;  %3658 = vmatprep.mubr.msk.f32.mxu0 %vm361_vm0, %v351_v59  ;;  %v4068_v58 = vpack.c.bf16 %v756_v57, %v755_v56 }
 0x277   :  { %v348_v61 = vmax.f32 %v288_v36, %v314_v60  ;;  %v322_v62 = vpop.permute.xlu1 %321  ;;  %v1020_v60 = vld [vmem:[%s5047_s2 + $0x180] sm:$0xff] }
 0x278   :  { %v352_v63 = vmax.f32 %v292_v38, %v322_v62  ;;  %v4056_v38 = vpack.c.bf16 %v760_v34, %v759_v33  ;;  %v1000_v62 = vld [vmem:[%s5049_s1] sm:$0xff] }
 0x279   :  { %3675 = vmatmul.mubr.msk.f32.vlgmr.msra.gmra.mrb[0].mxu1 %vm361_vm0, %v348_v61 }
 0x27a   :  { %v316_v0 = vpop.permute.xlu0 %315  ;;  %3659 = vmatmul.mubr.msk.f32.vlgmr.msra.gmra.mrb[12].mxu0 %vm361_vm0, %v352_v63  ;;  %4048 = vmatpush3.bf16.msra.mxu1 %v4047_v10  ;;  %v1001_v63 = vld [vmem:[%s5049_s1 + $0x8] sm:$0xff] }
 0x27b   :  { %v349_v1 = vmax.f32 %v289_v41, %v316_v0  ;;  %v324_v2 = vpop.permute.xlu1 %323  ;;  %4049 = vmatprep.subr.bf16.mxu1 %v4315_v39  ;;  %4072 = vmatpush3.bf16.msra.mxu0 %v4504_v17 }
 0x27c   :  { %v353_v3 = vmax.f32 %v293_v43, %v324_v2  ;;  %4073 = vmatprep.subr.bf16.mxu0 %v4315_v39  ;;  %v672_v43 = vld [vmem:[%s5047_s2 + $0xa8] sm:$0xff] }
 0x27d   :  { %3677 = vmatprep.mubr.msk.f32.mxu1 %vm361_vm0, %v349_v1  ;;  %v4059_v46 = vpack.c.bf16 %v672_v43, %v671_v42 }
 0x27e   :  { %v318_v4 = vpop.permute.xlu0 %317  ;;  %3661 = vmatprep.mubr.msk.f32.mxu0 %vm361_vm0, %v353_v3  ;;  %4051 = vmatpush3.bf16.msra.mxu1 %v4050_v13 }
 0x27f   :  { %v350_v5 = vmax.f32 %v290_v45, %v318_v4  ;;  %v326_v6 = vpop.permute.xlu1 %325  ;;  %4052 = vmatprep.subr.bf16.mxu1 %v4315_v39  ;;  %4075 = vmatpush3.bf16.msra.mxu0 %v4514_v20 }
 0x280   :  { %v354_v7 = vmax.f32 %v294_v47, %v326_v6  ;;  %4076 = vmatprep.subr.bf16.mxu0 %v4315_v39 }
 0x281   :  { %3678 = vmatmul.mubr.msk.f32.gmra.mrb[2].mxu1 %vm361_vm0, %v350_v5 }
 0x282   :  { %3662 = vmatmul.mubr.msk.f32.gmra.mrb[14].mxu0 %vm361_vm0, %v354_v7  ;;  %3688 = vmatprep.mubr.msk.f32.mxu1 %vm4316_vm1, %v4317_v14 }
 0x283   :  { %3764 = vmatprep.mubr.msk.f32.mxu0 %vm4316_vm1, %v4317_v14 }
 0x286   :  { %3765 = vmatmul.mubr.f32.vlgmr.msra.gmra.mrb[16].mxu0 %v4317_v14 }
 0x287   :  { %4078 = vmatpush3.bf16.msra.mxu0 %v4504_v17  ;;  %3775 = vmatprep.mubr.msk.f32.mxu0 %vm4316_vm1, %v4317_v14 }
 0x288   :  { %4079 = vmatprep.subr.bf16.mxu0 %v4315_v39 }
 0x28b   :  { %4081 = vmatpush3.bf16.msra.mxu0 %v4514_v20 }
 0x28c   :  { %4082 = vmatprep.subr.bf16.mxu0 %v4315_v39 }
 0x34c   :  { %v3676_v21 = vpop.f32.mrb[0].mxu1 }
 0x34d   :  { %v3660_v22 = vpop.f32.mrb[12].mxu0  ;;  %v636_v24 = vpop.f32.mrb[1].mxu1 }
 0x34e   :  { %v642_v25 = vadd.f32 %v3676_v21, %v3660_v22  ;;  %v440_v26 = vpop.f32.mrb[13].mxu0  ;;  %v4605_v21 = vld [vmem:[%s5047_s2 + $0x83] ss:$0 sm:$0xff] }
 0x34f   :  { %v637_v29 = vadd.f32 %v636_v24, %v440_v26 }
 0x350   :  { %v664_v30 = vadd.f32 %v3354_v23, %v642_v25 }
 0x351   :  { %v663_v51 = vadd.f32 %v3354_v23, %v637_v29 }
 0x352   :  { %v668_v32 = vmax.f32 %v664_v30, 0.0 }
 0x353   :  { %v667_v55 = vmax.f32 %v663_v51, 0.0 }
 0x354   :  { %v3679_v35 = vpop.f32.mrb[2].mxu1  ;;  %3689 = vmatmul.mubr.msk.f32.vlgmr.msra.gmra.mrb[4].mxu1 %vm679_vm2, %v668_v32 }
 0x355   :  { %4054 = vmatpush3.bf16.msra.mxu1 %v4053_v31  ;;  %v3663_v36 = vpop.f32.mrb[14].mxu0  ;;  %v646_v37 = vpop.f32.mrb[3].mxu1  ;;  %3699 = vmatprep.mubr.msk.f32.mxu1 %vm4316_vm1, %v4317_v14 }
 0x356   :  { %v652_v40 = vadd.f32 %v3679_v35, %v3663_v36  ;;  %v450_v41 = vpop.f32.mrb[15].mxu0  ;;  %4055 = vmatprep.subr.bf16.mxu1 %v4315_v39 }
 0x357   :  { %v647_v44 = vadd.f32 %v646_v37, %v450_v41 }
 0x358   :  { %v666_v45 = vadd.f32 %v3354_v23, %v652_v40 }
 0x359   :  { %4057 = vmatpush3.bf16.msra.mxu1 %v4056_v38  ;;  %v665_v59 = vadd.f32 %v3354_v23, %v647_v44  ;;  %v1329_v0 = vpop.f32.mrb[16].mxu0 }
 0x35a   :  { %v670_v47 = vmax.f32 %v666_v45, 0.0  ;;  %4058 = vmatprep.subr.bf16.mxu1 %v4315_v39  ;;  %v3766_v1 = vpop.f32.mrb[17].mxu0  ;;  %v1002_v45 = vld [vmem:[%s5049_s1 + $0x10] sm:$0xff] }
 0x35b   :  { %v669_v61 = vmax.f32 %v665_v59, 0.0 }
 0x35c   :  { %3700 = vmatmul.mubr.msk.f32.vlgmr.msra.gmra.mrb[6].mxu1 %vm679_vm2, %v670_v47 }
 0x35d   :  { %4060 = vmatpush3.bf16.msra.mxu1 %v4059_v46  ;;  %3710 = vmatprep.mubr.msk.f32.mxu1 %vm4316_vm1, %v4317_v14  ;;  %v1003_v46 = vld [vmem:[%s5049_s1 + $0x18] sm:$0xff] }
 0x35e   :  { %4061 = vmatprep.subr.bf16.mxu1 %v4315_v39 }
 0x361   :  { %4063 = vmatpush3.bf16.msra.mxu1 %v4062_v50 }
 0x362   :  { %4064 = vmatprep.subr.bf16.mxu1 %v4315_v39 }
 0x364   :  { %3711 = vmatmul.mubr.msk.f32.vlgmr.msra.gmra.mrb[8].mxu1 %vm679_vm2, %v667_v55 }
 0x365   :  { %4066 = vmatpush3.bf16.msra.mxu1 %v4065_v54  ;;  %3721 = vmatprep.mubr.msk.f32.mxu1 %vm4316_vm1, %v4317_v14 }
 0x366   :  { %4067 = vmatprep.subr.bf16.mxu1 %v4315_v39 }
 0x369   :  { %4069 = vmatpush3.bf16.msra.mxu1 %v4068_v58 }
 0x36a   :  { %3724 = vmatprep.subr.mxu1 %v1020_v60 }
 0x36c   :  { %3722 = vmatmul.mubr.msk.f32.vlgmr.msra.gmra.mrb[10].mxu1 %vm679_vm2, %v669_v61 }
 0x36d   :  { %3725 = vmatpush3.msra.mxu1 %v1020_v60  ;;  %3726 = vmatprep.mubr.msk.f32.mxu1 %vm361_vm0, %v1000_v62 }
 0x36e   :  { %4100 = vmatprep.subr.bf16.mxu1 %v4315_v39 }
 0x370   :  { %3727 = vmatmul.mubr.msk.f32.vlgmr.msra.gmra.mrb[12].mxu1 %vm361_vm0, %v1001_v63 }
 0x371   :  { %4102 = vmatpush3.bf16.msra.mxu1 %v4504_v17  ;;  %3729 = vmatprep.mubr.msk.f32.mxu1 %vm361_vm0, %v1002_v45  ;;  %v1010_v45 = vld [vmem:[%s5049_s1 + $0x50] sm:$0xff] }
 0x372   :  { %4103 = vmatprep.subr.bf16.mxu1 %v4315_v39 }
 0x374   :  { %3730 = vmatmul.mubr.msk.f32.gmra.mrb[14].mxu1 %vm361_vm0, %v1003_v46  ;;  %v1011_v46 = vld [vmem:[%s5049_s1 + $0x58] sm:$0xff] }
 0x375   :  { %4105 = vmatpush3.bf16.msra.mxu1 %v4514_v20 }
 0x376   :  { %4112 = vmatprep.subr.bf16.mxu1 %v4315_v39 }
 0x427   :  { %v749_v2 = vpop.f32.mrb[4].mxu1 }
 0x428   :  { %v3690_v3 = vpop.f32.mrb[5].mxu1 }
 0x42f   :  { %v830_v4 = vpop.f32.mrb[6].mxu1 }
 0x430   :  { %v3701_v5 = vpop.f32.mrb[7].mxu1 }
 0x437   :  { %v904_v6 = vpop.f32.mrb[8].mxu1 }
 0x438   :  { %v905_v7 = vadd.f32 %v904_v6, %v749_v2  ;;  %v3712_v8 = vpop.f32.mrb[9].mxu1 }
 0x43f   :  { %v977_v9 = vpop.f32.mrb[10].mxu1 }
 0x440   :  { %v978_v10 = vadd.f32 %v977_v9, %v830_v4  ;;  %v3723_v11 = vpop.f32.mrb[11].mxu1 }
 0x442   :  { %v4595_v12 = vadd.f32 %v978_v10, %v905_v7 }
 0x443   :  { %v3728_v13 = vpop.f32.mrb[12].mxu1 }
 0x444   :  { %v1147_v15 = vpop.f32.mrb[13].mxu1 }
 0x445   :  { %v1333_v16 = vadd.f32 %v1329_v0, %v1147_v15 }
 0x447   :  { %4230 = vtanh.f32 %v1333_v16  ;;  %v3731_v50 = vpop.f32.mrb[14].mxu1 }
 0x448   :  { %v1157_v51 = vpop.f32.mrb[15].mxu1 }
 0x451   :  { %v4231_v19 = vpop.eup %4230 }
 0x452   :  { %v1335_v22 = vmul.f32 %v4231_v19, %v4600_v18  ;;  %v1004_v19 = vld [vmem:[%s5049_s1 + $0x20] sm:$0xff] }
 0x453   :  { %3732 = vmatprep.mubr.msk.f32.mxu1 %vm361_vm0, %v1004_v19 }
 0x454   :  { %v1336_v23 = vadd.f32 %v4605_v21, %v1335_v22  ;;  %v1005_v22 = vld [vmem:[%s5049_s1 + $0x28] sm:$0xff] }
 0x455   :  { %3733 = vmatmul.mubr.msk.f32.gmra.mrb[16].mxu1 %vm361_vm0, %v1005_v22 }
 0x456   :  { %1339 = vrot.lane.b32.xlu0 %v1336_v23, %s4318_s18  ;;  %v1337_v26 = vmul.f32 0.0, %v1336_v23 }
 0x4c8   :  { %v1340_v24 = vpop.permute.xlu0 %1339 }
 0x4c9   :  { %v1342_v25 = vmul.f32 %v1340_v24, %v1336_v23 }
 0x4cb   :  { %1344 = vrot.lane.b32.xlu1 %v1342_v25, %s4319_s19 }
 0x53d   :  { %v1345_v27 = vpop.permute.xlu1 %1344 }
 0x53e   :  { %v1347_v28 = vadd.f32 %v1345_v27, %v1337_v26  ;;  %v4668_v26 = vpop.f32.mrb[16].mxu1 }
 0x53f   :  { %v1167_v27 = vpop.f32.mrb[17].mxu1 }
 0x540   :  { %4232 = vtanh.f32 %v1347_v28 }
 0x54a   :  { %v4233_v29 = vpop.eup %4232 }
 0x54b   :  { %1350 = vrot.lane.b32.xlu0 %v4233_v29, %s4318_s18 }
 0x5bd   :  { %v1351_v30 = vpop.permute.xlu0 %1350 }
 0x5be   :  { %v1353_v31 = vmul.f32 %v1351_v30, %v1336_v23 }
 0x5c0   :  { %1355 = vrot.lane.b32.xlu1 %v1353_v31, %s4319_s19 }
 0x632   :  { %v1356_v32 = vpop.permute.xlu1 %1355 }
 0x633   :  { %3776 = vmatmul.mubr.msk.f32.vlgmr.msra.gmra.mrb[18].mxu0 %vm679_vm2, %v1356_v32 }
 0x634   :  { %4084 = vmatpush3.bf16.msra.mxu0 %v4504_v17  ;;  %3786 = vmatprep.mubr.msk.f32.mxu0 %vm4316_vm1, %v4317_v14 }
 0x635   :  { %4085 = vmatprep.subr.bf16.mxu0 %v4315_v39 }
 0x638   :  { %4087 = vmatpush3.bf16.msra.mxu0 %v4514_v20 }
 0x639   :  { %4088 = vmatprep.subr.bf16.mxu0 %v4315_v39 }
 0x706   :  { %v1425_v33 = vpop.f32.mrb[18].mxu0 }
 0x707   :  { %v1429_v34 = vadd.f32 %v3728_v13, %v1425_v33  ;;  %v3777_v35 = vpop.f32.mrb[19].mxu0 }
 0x709   :  { %4234 = vtanh.f32 %v1429_v34 }
 0x713   :  { %v4235_v36 = vpop.eup %4234 }
 0x714   :  { %v1431_v37 = vmul.f32 %v4235_v36, %v4600_v18 }
 0x716   :  { %v1432_v38 = vadd.f32 %v4605_v21, %v1431_v37 }
 0x718   :  { %1435 = vrot.lane.b32.xlu0 %v1432_v38, %s4318_s18  ;;  %v1433_v42 = vmul.f32 %v1432_v38, %v1347_v28 }
 0x78a   :  { %v1436_v40 = vpop.permute.xlu0 %1435 }
 0x78b   :  { %v1438_v41 = vmul.f32 %v1436_v40, %v1432_v38 }
 0x78d   :  { %1440 = vrot.lane.b32.xlu1 %v1438_v41, %s4319_s19  ;;  %v1006_v41 = vld [vmem:[%s5049_s1 + $0x30] sm:$0xff] }
 0x78e   :  { %3735 = vmatprep.mubr.msk.f32.mxu1 %vm361_vm0, %v1006_v41 }
 0x7ff   :  { %v1441_v43 = vpop.permute.xlu1 %1440 }
 0x800   :  { %v1443_v44 = vadd.f32 %v1441_v43, %v1433_v42  ;;  %v1007_v42 = vld [vmem:[%s5049_s1 + $0x38] sm:$0xff]  ;;  %v1008_v43 = vld [vmem:[%s5049_s1 + $0x40] sm:$0xff] }
 0x801   :  { %3736 = vmatmul.mubr.msk.f32.gmra.mrb[18].mxu1 %vm361_vm0, %v1007_v42 }
 0x802   :  { %4236 = vtanh.f32 %v1443_v44  ;;  %3738 = vmatprep.mubr.msk.f32.mxu1 %vm361_vm0, %v1008_v43 }
 0x80c   :  { %v4237_v47 = vpop.eup %4236 }
 0x80d   :  { %1446 = vrot.lane.b32.xlu0 %v4237_v47, %s4318_s18  ;;  %v1012_v47 = vld [vmem:[%s5049_s1 + $0x60] sm:$0xff] }
 0x87f   :  { %v1447_v48 = vpop.permute.xlu0 %1446 }
 0x880   :  { %v1449_v49 = vmul.f32 %v1447_v48, %v1432_v38 }
 0x882   :  { %1451 = vrot.lane.b32.xlu1 %v1449_v49, %s4319_s19  ;;  %v1013_v49 = vld [vmem:[%s5049_s1 + $0x68] sm:$0xff] }
 0x8f4   :  { %v1452_v52 = vpop.permute.xlu1 %1451 }
 0x8f5   :  { %3787 = vmatmul.mubr.msk.f32.vlgmr.msra.gmra.mrb[20].mxu0 %vm679_vm2, %v1452_v52  ;;  %v1016_v52 = vld [vmem:[%s5049_s1 + $0x80] sm:$0xff] }
 0x8f6   :  { %4090 = vmatpush3.bf16.msra.mxu0 %v4504_v17  ;;  %3797 = vmatprep.mubr.msk.f32.mxu0 %vm4316_vm1, %v4317_v14 }
 0x8f7   :  { %4091 = vmatprep.subr.bf16.mxu0 %v4315_v39 }
 0x8fa   :  { %4093 = vmatpush3.bf16.msra.mxu0 %v4514_v20 }
 0x8fb   :  { %4094 = vmatprep.subr.bf16.mxu0 %v4315_v39 }
 0x9c8   :  { %v1521_v53 = vpop.f32.mrb[20].mxu0 }
 0x9c9   :  { %v1525_v54 = vadd.f32 %v1521_v53, %v1157_v51  ;;  %v3788_v55 = vpop.f32.mrb[21].mxu0  ;;  %v1015_v51 = vld [vmem:[%s5049_s1 + $0x78] sm:$0xff]  ;;  %v1017_v53 = vld [vmem:[%s5049_s1 + $0x88] sm:$0xff] }
 0x9ca   :  { %v1019_v55 = vld [vmem:[%s5049_s1 + $0x98] sm:$0xff] }
 0x9cb   :  { %4238 = vtanh.f32 %v1525_v54  ;;  %v1018_v54 = vld [vmem:[%s5049_s1 + $0x90] sm:$0xff] }
 0x9d5   :  { %v4239_v56 = vpop.eup %4238 }
 0x9d6   :  { %v1527_v57 = vmul.f32 %v4239_v56, %v4600_v18 }
 0x9d8   :  { %v1528_v58 = vadd.f32 %v4605_v21, %v1527_v57 }
 0x9da   :  { %1531 = vrot.lane.b32.xlu0 %v1528_v58, %s4318_s18  ;;  %v1529_v61 = vmul.f32 %v1528_v58, %v1443_v44  ;;  %v1009_v44 = vld [vmem:[%s5049_s1 + $0x48] sm:$0xff] }
 0x9db   :  { %3739 = vmatmul.mubr.msk.f32.gmra.mrb[20].mxu1 %vm361_vm0, %v1009_v44 }
 0x9dc   :  { %3741 = vmatprep.mubr.msk.f32.mxu1 %vm361_vm0, %v1010_v45 }
 0x9df   :  { %3742 = vmatmul.mubr.msk.f32.gmra.mrb[22].mxu1 %vm361_vm0, %v1011_v46 }
 0x9e0   :  { %3744 = vmatprep.mubr.msk.f32.mxu1 %vm361_vm0, %v1012_v47 }
 0x9e3   :  { %3745 = vmatmul.mubr.msk.f32.gmra.mrb[24].mxu1 %vm361_vm0, %v1013_v49 }
 0xa4c   :  { %v1532_v59 = vpop.permute.xlu0 %1531 }
 0xa4d   :  { %v1534_v60 = vmul.f32 %v1532_v59, %v1528_v58 }
 0xa4f   :  { %1536 = vrot.lane.b32.xlu1 %v1534_v60, %s4319_s19 }
 0xac1   :  { %v1537_v62 = vpop.permute.xlu1 %1536 }
 0xac2   :  { %v1539_v63 = vadd.f32 %v1537_v62, %v1529_v61 }
 0xac4   :  { %4240 = vtanh.f32 %v1539_v63 }
 0xace   :  { %v4241_v0 = vpop.eup %4240 }
 0xacf   :  { %1542 = vrot.lane.b32.xlu0 %v4241_v0, %s4318_s18 }
 0xb41   :  { %v1543_v1 = vpop.permute.xlu0 %1542 }
 0xb42   :  { %v1545_v2 = vmul.f32 %v1543_v1, %v1528_v58  ;;  %v4744_v58 = vpop.f32.mrb[18].mxu1 }
 0xb43   :  { %v1177_v59 = vpop.f32.mrb[19].mxu1 }
 0xb44   :  { %1547 = vrot.lane.b32.xlu1 %v1545_v2, %s4319_s19  ;;  %v4746_v60 = vpop.f32.mrb[20].mxu1 }
 0xb45   :  { %v4748_v61 = vpop.f32.mrb[21].mxu1 }
 0xb46   :  { %v4750_v62 = vpop.f32.mrb[22].mxu1 }
 0xbb6   :  { %v1548_v3 = vpop.permute.xlu1 %1547 }
 0xbb7   :  { %3798 = vmatmul.mubr.msk.f32.vlgmr.msra.gmra.mrb[22].mxu0 %vm679_vm2, %v1548_v3 }
 0xbb8   :  { %4096 = vmatpush3.bf16.msra.mxu0 %v4504_v17  ;;  %3808 = vmatprep.mubr.msk.f32.mxu0 %vm4316_vm1, %v4317_v14 }
 0xbb9   :  { %4097 = vmatprep.subr.bf16.mxu0 %v4315_v39 }
 0xbbc   :  { %4099 = vmatpush3.bf16.msra.mxu0 %v4514_v20 }
 0xbbd   :  { %4106 = vmatprep.subr.bf16.mxu0 %v4315_v39 }
 0xc8a   :  { %v1617_v4 = vpop.f32.mrb[22].mxu0 }
 0xc8b   :  { %v1621_v5 = vadd.f32 %v3731_v50, %v1617_v4  ;;  %v3799_v6 = vpop.f32.mrb[23].mxu0  ;;  %v1014_v50 = vld [vmem:[%s5049_s1 + $0x70] sm:$0xff] }
 0xc8c   :  { %3747 = vmatprep.mubr.msk.f32.mxu1 %vm361_vm0, %v1014_v50 }
 0xc8d   :  { %4242 = vtanh.f32 %v1621_v5  ;;  %3748 = vmatmul.mubr.msk.f32.gmra.mrb[26].mxu1 %vm361_vm0, %v1015_v51 }
 0xc8e   :  { %3750 = vmatprep.mubr.msk.f32.mxu1 %vm361_vm0, %v1016_v52 }
 0xc91   :  { %3751 = vmatmul.mubr.msk.f32.gmra.mrb[28].mxu1 %vm361_vm0, %v1017_v53 }
 0xc92   :  { %3753 = vmatprep.mubr.msk.f32.mxu1 %vm361_vm0, %v1018_v54 }
 0xc95   :  { %3754 = vmatmul.mubr.msk.f32.gmra.mrb[30].mxu1 %vm361_vm0, %v1019_v55 }
 0xc96   :  { %3819 = vmatprep.mubr.msk.f32.mxu1 %vm4316_vm1, %v4317_v14 }
 0xc97   :  { %v4243_v7 = vpop.eup %4242 }
 0xc98   :  { %v1623_v8 = vmul.f32 %v4243_v7, %v4600_v18 }
 0xc9a   :  { %v1624_v9 = vadd.f32 %v4605_v21, %v1623_v8 }
 0xc9c   :  { %1627 = vrot.lane.b32.xlu0 %v1624_v9, %s4318_s18  ;;  %v1625_v13 = vmul.f32 %v1624_v9, %v1539_v63  ;;  %v4752_v63 = vpop.f32.mrb[23].mxu1 }
 0xc9d   :  { %v4754_v0 = vpop.f32.mrb[24].mxu1 }
 0xc9e   :  { %v4756_v1 = vpop.f32.mrb[25].mxu1 }
 0xd0e   :  { %v1628_v10 = vpop.permute.xlu0 %1627 }
 0xd0f   :  { %v1630_v11 = vmul.f32 %v1628_v10, %v1624_v9 }
 0xd11   :  { %1632 = vrot.lane.b32.xlu1 %v1630_v11, %s4319_s19 }
 0xd60   :  { %v4758_v2 = vpop.f32.mrb[26].mxu1 }
 0xd61   :  { %v4760_v3 = vpop.f32.mrb[27].mxu1 }
 0xd64   :  { %v4762_v4 = vpop.f32.mrb[28].mxu1 }
 0xd65   :  { %v4764_v5 = vpop.f32.mrb[29].mxu1 }
 0xd68   :  { %v4766_v6 = vpop.f32.mrb[30].mxu1 }
 0xd69   :  { %v4768_v7 = vpop.f32.mrb[31].mxu1 }
 0xd83   :  { %v1633_v15 = vpop.permute.xlu1 %1632 }
 0xd84   :  { %v1635_v16 = vadd.f32 %v1633_v15, %v1625_v13 }
 0xd86   :  { %4244 = vtanh.f32 %v1635_v16 }
 0xd90   :  { %v4245_v23 = vpop.eup %4244 }
 0xd91   :  { %1638 = vrot.lane.b32.xlu0 %v4245_v23, %s4318_s18 }
 0xe03   :  { %v1639_v24 = vpop.permute.xlu0 %1638 }
 0xe04   :  { %v1641_v25 = vmul.f32 %v1639_v24, %v1624_v9 }
 0xe06   :  { %1643 = vrot.lane.b32.xlu1 %v1641_v25, %s4319_s19 }
 0xe78   :  { %v1644_v28 = vpop.permute.xlu1 %1643 }
 0xe79   :  { %3809 = vmatmul.mubr.msk.f32.vlgmr.msra.gmra.mrb[24].mxu0 %vm679_vm2, %v1644_v28 }
 0xe7a   :  { %4108 = vmatpush3.bf16.msra.mxu0 %v4504_v17  ;;  %3830 = vmatprep.mubr.msk.f32.mxu0 %vm4316_vm1, %v4317_v14 }
 0xe7b   :  { %4109 = vmatprep.subr.bf16.mxu0 %v4315_v39 }
 0xe7e   :  { %4111 = vmatpush3.bf16.msra.mxu0 %v4514_v20 }
 0xe7f   :  { %4118 = vmatprep.subr.bf16.mxu0 %v4315_v39 }
 0xf4c   :  { %v1713_v29 = vpop.f32.mrb[24].mxu0 }
 0xf4d   :  { %v1717_v30 = vadd.f32 %v1713_v29, %v1167_v27  ;;  %v3810_v31 = vpop.f32.mrb[25].mxu0 }
 0xf4f   :  { %4246 = vtanh.f32 %v1717_v30 }
 0xf59   :  { %v4247_v32 = vpop.eup %4246 }
 0xf5a   :  { %v1719_v33 = vmul.f32 %v4247_v32, %v4600_v18 }
 0xf5c   :  { %v1720_v34 = vadd.f32 %v4605_v21, %v1719_v33 }
 0xf5e   :  { %1723 = vrot.lane.b32.xlu0 %v1720_v34, %s4318_s18  ;;  %v1721_v37 = vmul.f32 %v1720_v34, %v1635_v16 }
 0xfd0   :  { %v1724_v35 = vpop.permute.xlu0 %1723 }
 0xfd1   :  { %v1726_v36 = vmul.f32 %v1724_v35, %v1720_v34 }
 0xfd3   :  { %1728 = vrot.lane.b32.xlu1 %v1726_v36, %s4319_s19 }
0x1045   :  { %v1729_v38 = vpop.permute.xlu1 %1728 }
0x1046   :  { %v4681_v40 = vadd.f32 %v1729_v38, %v1721_v37 }
0x1048   :  { %4248 = vtanh.f32 %v4681_v40 }
0x1052   :  { %v4249_v48 = vpop.eup %4248 }
0x1053   :  { %1734 = vrot.lane.b32.xlu0 %v4249_v48, %s4318_s18 }
0x10c5   :  { %v1735_v56 = vpop.permute.xlu0 %1734 }
0x10c6   :  { %v1737_v57 = vmul.f32 %v1735_v56, %v1720_v34 }
0x10c8   :  { %1739 = vrot.lane.b32.xlu1 %v1737_v57, %s4319_s19 }
0x113a   :  { %v1740_v8 = vpop.permute.xlu1 %1739 }
0x113b   :  { %3820 = vmatmul.mubr.msk.f32.vlgmr.msra.gmra.mrb[32].mxu1 %vm679_vm2, %v1740_v8 }
0x113c   :  { %4114 = vmatpush3.bf16.msra.mxu1 %v4504_v17  ;;  %3841 = vmatprep.mubr.msk.f32.mxu1 %vm4316_vm1, %v4317_v14 }
0x113d   :  { %4115 = vmatprep.subr.bf16.mxu1 %v4315_v39 }
0x1140   :  { %4117 = vmatpush3.bf16.msra.mxu1 %v4514_v20 }
0x1141   :  { %4124 = vmatprep.subr.bf16.mxu1 %v4315_v39 }
0x120e   :  { %v1809_v9 = vpop.f32.mrb[32].mxu1 }
0x120f   :  { %v1813_v10 = vadd.f32 %v4668_v26, %v1809_v9  ;;  %v3821_v11 = vpop.f32.mrb[33].mxu1 }
0x1211   :  { %4250 = vtanh.f32 %v1813_v10 }
0x121b   :  { %v4251_v13 = vpop.eup %4250 }
0x121c   :  { %v1815_v15 = vmul.f32 %v4251_v13, %v4600_v18 }
0x121e   :  { %v1816_v16 = vadd.f32 %v4605_v21, %v1815_v15 }
0x1220   :  { %1819 = vrot.lane.b32.xlu0 %v1816_v16, %s4318_s18  ;;  %v1817_v23 = vmul.f32 %v1816_v16, %v4681_v40 }
0x1292   :  { %v1820_v19 = vpop.permute.xlu0 %1819 }
0x1293   :  { %v1822_v22 = vmul.f32 %v1820_v19, %v1816_v16 }
0x1295   :  { %1824 = vrot.lane.b32.xlu1 %v1822_v22, %s4319_s19 }
0x1307   :  { %v1825_v24 = vpop.permute.xlu1 %1824 }
0x1308   :  { %v1827_v25 = vadd.f32 %v1825_v24, %v1817_v23 }
0x130a   :  { %4252 = vtanh.f32 %v1827_v25 }
0x1314   :  { %v4253_v27 = vpop.eup %4252 }
0x1315   :  { %1830 = vrot.lane.b32.xlu0 %v4253_v27, %s4318_s18 }
0x1387   :  { %v1831_v26 = vpop.permute.xlu0 %1830 }
0x1388   :  { %v1833_v28 = vmul.f32 %v1831_v26, %v1816_v16 }
0x138a   :  { %1835 = vrot.lane.b32.xlu1 %v1833_v28, %s4319_s19 }
0x13fc   :  { %v1836_v29 = vpop.permute.xlu1 %1835 }
0x13fd   :  { %3831 = vmatmul.mubr.msk.f32.vlgmr.msra.gmra.mrb[26].mxu0 %vm679_vm2, %v1836_v29 }
0x13fe   :  { %4120 = vmatpush3.bf16.msra.mxu0 %v4504_v17  ;;  %3852 = vmatprep.mubr.msk.f32.mxu0 %vm4316_vm1, %v4317_v14 }
0x13ff   :  { %4121 = vmatprep.subr.bf16.mxu0 %v4315_v39 }
0x1402   :  { %4123 = vmatpush3.bf16.msra.mxu0 %v4514_v20 }
0x1403   :  { %4130 = vmatprep.subr.bf16.mxu0 %v4315_v39 }
0x14d0   :  { %v1905_v30 = vpop.f32.mrb[26].mxu0 }
0x14d1   :  { %v1909_v31 = vadd.f32 %v1905_v30, %v1177_v59  ;;  %v3832_v32 = vpop.f32.mrb[27].mxu0 }
0x14d3   :  { %4254 = vtanh.f32 %v1909_v31 }
0x14dd   :  { %v4255_v33 = vpop.eup %4254 }
0x14de   :  { %v1911_v34 = vmul.f32 %v4255_v33, %v4600_v18 }
0x14e0   :  { %v1912_v35 = vadd.f32 %v4605_v21, %v1911_v34 }
0x14e2   :  { %1915 = vrot.lane.b32.xlu0 %v1912_v35, %s4318_s18  ;;  %v1913_v38 = vmul.f32 %v1912_v35, %v1827_v25 }
0x1554   :  { %v1916_v36 = vpop.permute.xlu0 %1915 }
0x1555   :  { %v1918_v37 = vmul.f32 %v1916_v36, %v1912_v35 }
0x1557   :  { %1920 = vrot.lane.b32.xlu1 %v1918_v37, %s4319_s19 }
0x15c9   :  { %v1921_v40 = vpop.permute.xlu1 %1920 }
0x15ca   :  { %v1923_v41 = vadd.f32 %v1921_v40, %v1913_v38 }
0x15cc   :  { %4256 = vtanh.f32 %v1923_v41 }
0x15d6   :  { %v4257_v42 = vpop.eup %4256 }
0x15d7   :  { %1926 = vrot.lane.b32.xlu0 %v4257_v42, %s4318_s18 }
0x1649   :  { %v1927_v43 = vpop.permute.xlu0 %1926 }
0x164a   :  { %v1929_v44 = vmul.f32 %v1927_v43, %v1912_v35 }
0x164c   :  { %1931 = vrot.lane.b32.xlu1 %v1929_v44, %s4319_s19 }
0x16be   :  { %v1932_v45 = vpop.permute.xlu1 %1931 }
0x16bf   :  { %3842 = vmatmul.mubr.msk.f32.vlgmr.msra.gmra.mrb[34].mxu1 %vm679_vm2, %v1932_v45 }
0x16c0   :  { %4126 = vmatpush3.bf16.msra.mxu1 %v4504_v17  ;;  %3863 = vmatprep.mubr.msk.f32.mxu1 %vm4316_vm1, %v4317_v14 }
0x16c1   :  { %4127 = vmatprep.subr.bf16.mxu1 %v4315_v39 }
0x16c4   :  { %4129 = vmatpush3.bf16.msra.mxu1 %v4514_v20 }
0x16c5   :  { %4136 = vmatprep.subr.bf16.mxu1 %v4315_v39 }
0x1792   :  { %v2001_v46 = vpop.f32.mrb[34].mxu1 }
0x1793   :  { %v2005_v47 = vadd.f32 %v4744_v58, %v2001_v46  ;;  %v3843_v48 = vpop.f32.mrb[35].mxu1 }
0x1795   :  { %4258 = vtanh.f32 %v2005_v47 }
0x179f   :  { %v4259_v49 = vpop.eup %4258 }
0x17a0   :  { %v2007_v50 = vmul.f32 %v4259_v49, %v4600_v18 }
0x17a2   :  { %v2008_v51 = vadd.f32 %v4605_v21, %v2007_v50 }
0x17a4   :  { %2011 = vrot.lane.b32.xlu0 %v2008_v51, %s4318_s18  ;;  %v2009_v54 = vmul.f32 %v2008_v51, %v1923_v41 }
0x1816   :  { %v2012_v52 = vpop.permute.xlu0 %2011 }
0x1817   :  { %v2014_v53 = vmul.f32 %v2012_v52, %v2008_v51 }
0x1819   :  { %2016 = vrot.lane.b32.xlu1 %v2014_v53, %s4319_s19 }
0x188b   :  { %v2017_v55 = vpop.permute.xlu1 %2016 }
0x188c   :  { %v2019_v56 = vadd.f32 %v2017_v55, %v2009_v54 }
0x188e   :  { %4260 = vtanh.f32 %v2019_v56 }
0x1898   :  { %v4261_v57 = vpop.eup %4260 }
0x1899   :  { %2022 = vrot.lane.b32.xlu0 %v4261_v57, %s4318_s18 }
0x190b   :  { %v2023_v58 = vpop.permute.xlu0 %2022 }
0x190c   :  { %v2025_v59 = vmul.f32 %v2023_v58, %v2008_v51 }
0x190e   :  { %2027 = vrot.lane.b32.xlu1 %v2025_v59, %s4319_s19 }
0x1980   :  { %v2028_v8 = vpop.permute.xlu1 %2027 }
0x1981   :  { %3853 = vmatmul.mubr.msk.f32.vlgmr.msra.gmra.mrb[28].mxu0 %vm679_vm2, %v2028_v8 }
0x1982   :  { %4132 = vmatpush3.bf16.msra.mxu0 %v4504_v17  ;;  %3874 = vmatprep.mubr.msk.f32.mxu0 %vm4316_vm1, %v4317_v14 }
0x1983   :  { %4133 = vmatprep.subr.bf16.mxu0 %v4315_v39 }
0x1986   :  { %4135 = vmatpush3.bf16.msra.mxu0 %v4514_v20 }
0x1987   :  { %4142 = vmatprep.subr.bf16.mxu0 %v4315_v39 }
0x1a54   :  { %v2097_v9 = vpop.f32.mrb[28].mxu0 }
0x1a55   :  { %v2101_v10 = vadd.f32 %v2097_v9, %v4748_v61  ;;  %v3854_v11 = vpop.f32.mrb[29].mxu0 }
0x1a57   :  { %4262 = vtanh.f32 %v2101_v10 }
0x1a61   :  { %v4263_v13 = vpop.eup %4262 }
0x1a62   :  { %v2103_v15 = vmul.f32 %v4263_v13, %v4600_v18 }
0x1a64   :  { %v2104_v16 = vadd.f32 %v4605_v21, %v2103_v15 }
0x1a66   :  { %2107 = vrot.lane.b32.xlu0 %v2104_v16, %s4318_s18  ;;  %v2105_v23 = vmul.f32 %v2104_v16, %v2019_v56 }
0x1ad8   :  { %v2108_v19 = vpop.permute.xlu0 %2107 }
0x1ad9   :  { %v2110_v22 = vmul.f32 %v2108_v19, %v2104_v16 }
0x1adb   :  { %2112 = vrot.lane.b32.xlu1 %v2110_v22, %s4319_s19 }
0x1b4d   :  { %v2113_v24 = vpop.permute.xlu1 %2112 }
0x1b4e   :  { %v2115_v25 = vadd.f32 %v2113_v24, %v2105_v23 }
0x1b50   :  { %4264 = vtanh.f32 %v2115_v25 }
0x1b5a   :  { %v4265_v27 = vpop.eup %4264 }
0x1b5b   :  { %2118 = vrot.lane.b32.xlu0 %v4265_v27, %s4318_s18 }
0x1bcd   :  { %v2119_v61 = vpop.permute.xlu0 %2118 }
0x1bce   :  { %v2121_v26 = vmul.f32 %v2119_v61, %v2104_v16 }
0x1bd0   :  { %2123 = vrot.lane.b32.xlu1 %v2121_v26, %s4319_s19 }
0x1c42   :  { %v2124_v28 = vpop.permute.xlu1 %2123 }
0x1c43   :  { %3864 = vmatmul.mubr.msk.f32.vlgmr.msra.gmra.mrb[36].mxu1 %vm679_vm2, %v2124_v28 }
0x1c44   :  { %4138 = vmatpush3.bf16.msra.mxu1 %v4504_v17  ;;  %3885 = vmatprep.mubr.msk.f32.mxu1 %vm4316_vm1, %v4317_v14 }
0x1c45   :  { %4139 = vmatprep.subr.bf16.mxu1 %v4315_v39 }
0x1c48   :  { %4141 = vmatpush3.bf16.msra.mxu1 %v4514_v20 }
0x1c49   :  { %4148 = vmatprep.subr.bf16.mxu1 %v4315_v39 }
0x1d16   :  { %v2193_v29 = vpop.f32.mrb[36].mxu1 }
0x1d17   :  { %v2197_v30 = vadd.f32 %v4746_v60, %v2193_v29  ;;  %v3865_v31 = vpop.f32.mrb[37].mxu1 }
0x1d19   :  { %4266 = vtanh.f32 %v2197_v30 }
0x1d23   :  { %v4267_v32 = vpop.eup %4266 }
0x1d24   :  { %v2199_v33 = vmul.f32 %v4267_v32, %v4600_v18 }
0x1d26   :  { %v2200_v34 = vadd.f32 %v4605_v21, %v2199_v33 }
0x1d28   :  { %2203 = vrot.lane.b32.xlu0 %v2200_v34, %s4318_s18  ;;  %v2201_v37 = vmul.f32 %v2200_v34, %v2115_v25 }
0x1d9a   :  { %v2204_v35 = vpop.permute.xlu0 %2203 }
0x1d9b   :  { %v2206_v36 = vmul.f32 %v2204_v35, %v2200_v34 }
0x1d9d   :  { %2208 = vrot.lane.b32.xlu1 %v2206_v36, %s4319_s19 }
0x1e0f   :  { %v2209_v38 = vpop.permute.xlu1 %2208 }
0x1e10   :  { %v2211_v40 = vadd.f32 %v2209_v38, %v2201_v37 }
0x1e12   :  { %4268 = vtanh.f32 %v2211_v40 }
0x1e1c   :  { %v4269_v41 = vpop.eup %4268 }
0x1e1d   :  { %2214 = vrot.lane.b32.xlu0 %v4269_v41, %s4318_s18 }
0x1e8f   :  { %v2215_v60 = vpop.permute.xlu0 %2214 }
0x1e90   :  { %v2217_v42 = vmul.f32 %v2215_v60, %v2200_v34 }
0x1e92   :  { %2219 = vrot.lane.b32.xlu1 %v2217_v42, %s4319_s19 }
0x1f04   :  { %v2220_v43 = vpop.permute.xlu1 %2219 }
0x1f05   :  { %3875 = vmatmul.mubr.msk.f32.vlgmr.msra.gmra.mrb[30].mxu0 %vm679_vm2, %v2220_v43 }
0x1f06   :  { %4144 = vmatpush3.bf16.msra.mxu0 %v4504_v17  ;;  %3896 = vmatprep.mubr.msk.f32.mxu0 %vm4316_vm1, %v4317_v14 }
0x1f07   :  { %4145 = vmatprep.subr.bf16.mxu0 %v4315_v39 }
0x1f0a   :  { %4147 = vmatpush3.bf16.msra.mxu0 %v4514_v20 }
0x1f0b   :  { %4154 = vmatprep.subr.bf16.mxu0 %v4315_v39 }
0x1fd8   :  { %v2289_v44 = vpop.f32.mrb[30].mxu0 }
0x1fd9   :  { %v2293_v45 = vadd.f32 %v2289_v44, %v4752_v63  ;;  %v3876_v46 = vpop.f32.mrb[31].mxu0 }
0x1fdb   :  { %4270 = vtanh.f32 %v2293_v45 }
0x1fe5   :  { %v4271_v47 = vpop.eup %4270 }
0x1fe6   :  { %v2295_v48 = vmul.f32 %v4271_v47, %v4600_v18 }
0x1fe8   :  { %v2296_v49 = vadd.f32 %v4605_v21, %v2295_v48 }
0x1fea   :  { %2299 = vrot.lane.b32.xlu0 %v2296_v49, %s4318_s18  ;;  %v2297_v52 = vmul.f32 %v2296_v49, %v2211_v40 }
0x205c   :  { %v2300_v50 = vpop.permute.xlu0 %2299 }
0x205d   :  { %v2302_v51 = vmul.f32 %v2300_v50, %v2296_v49 }
0x205f   :  { %2304 = vrot.lane.b32.xlu1 %v2302_v51, %s4319_s19 }
0x20d1   :  { %v2305_v53 = vpop.permute.xlu1 %2304 }
0x20d2   :  { %v2307_v54 = vadd.f32 %v2305_v53, %v2297_v52 }
0x20d4   :  { %4272 = vtanh.f32 %v2307_v54 }
0x20de   :  { %v4273_v55 = vpop.eup %4272 }
0x20df   :  { %2310 = vrot.lane.b32.xlu0 %v4273_v55, %s4318_s18 }
0x2151   :  { %v2311_v63 = vpop.permute.xlu0 %2310 }
0x2152   :  { %v2313_v56 = vmul.f32 %v2311_v63, %v2296_v49 }
0x2154   :  { %2315 = vrot.lane.b32.xlu1 %v2313_v56, %s4319_s19 }
0x21c6   :  { %v2316_v57 = vpop.permute.xlu1 %2315 }
0x21c7   :  { %3886 = vmatmul.mubr.msk.f32.vlgmr.msra.gmra.mrb[38].mxu1 %vm679_vm2, %v2316_v57 }
0x21c8   :  { %4150 = vmatpush3.bf16.msra.mxu1 %v4504_v17  ;;  %3907 = vmatprep.mubr.msk.f32.mxu1 %vm4316_vm1, %v4317_v14 }
0x21c9   :  { %4151 = vmatprep.subr.bf16.mxu1 %v4315_v39 }
0x21cc   :  { %4153 = vmatpush3.bf16.msra.mxu1 %v4514_v20 }
0x21cd   :  { %4160 = vmatprep.subr.bf16.mxu1 %v4315_v39 }
0x229a   :  { %v2385_v58 = vpop.f32.mrb[38].mxu1 }
0x229b   :  { %v2389_v59 = vadd.f32 %v4750_v62, %v2385_v58  ;;  %v3887_v8 = vpop.f32.mrb[39].mxu1 }
0x229d   :  { %4274 = vtanh.f32 %v2389_v59 }
0x22a7   :  { %v4275_v9 = vpop.eup %4274 }
0x22a8   :  { %v2391_v10 = vmul.f32 %v4275_v9, %v4600_v18 }
0x22aa   :  { %v2392_v11 = vadd.f32 %v4605_v21, %v2391_v10 }
0x22ac   :  { %2395 = vrot.lane.b32.xlu0 %v2392_v11, %s4318_s18  ;;  %v2393_v16 = vmul.f32 %v2392_v11, %v2307_v54 }
0x231e   :  { %v2396_v13 = vpop.permute.xlu0 %2395 }
0x231f   :  { %v2398_v15 = vmul.f32 %v2396_v13, %v2392_v11 }
0x2321   :  { %2400 = vrot.lane.b32.xlu1 %v2398_v15, %s4319_s19 }
0x2393   :  { %v2401_v19 = vpop.permute.xlu1 %2400 }
0x2394   :  { %v2403_v22 = vadd.f32 %v2401_v19, %v2393_v16 }
0x2396   :  { %4276 = vtanh.f32 %v2403_v22 }
0x23a0   :  { %v4277_v23 = vpop.eup %4276 }
0x23a1   :  { %2406 = vrot.lane.b32.xlu0 %v4277_v23, %s4318_s18 }
0x2413   :  { %v2407_v62 = vpop.permute.xlu0 %2406 }
0x2414   :  { %v2409_v24 = vmul.f32 %v2407_v62, %v2392_v11 }
0x2416   :  { %2411 = vrot.lane.b32.xlu1 %v2409_v24, %s4319_s19 }
0x2488   :  { %v2412_v25 = vpop.permute.xlu1 %2411 }
0x2489   :  { %3897 = vmatmul.mubr.msk.f32.vlgmr.msra.gmra.mrb[32].mxu0 %vm679_vm2, %v2412_v25 }
0x248a   :  { %4156 = vmatpush3.bf16.msra.mxu0 %v4504_v17  ;;  %3918 = vmatprep.mubr.msk.f32.mxu0 %vm4316_vm1, %v4317_v14 }
0x248b   :  { %4157 = vmatprep.subr.bf16.mxu0 %v4315_v39 }
0x248e   :  { %4159 = vmatpush3.bf16.msra.mxu0 %v4514_v20 }
0x248f   :  { %4166 = vmatprep.subr.bf16.mxu0 %v4315_v39 }
0x255c   :  { %v2481_v27 = vpop.f32.mrb[32].mxu0 }
0x255d   :  { %v2485_v61 = vadd.f32 %v2481_v27, %v4756_v1  ;;  %v3898_v26 = vpop.f32.mrb[33].mxu0 }
0x255f   :  { %4278 = vtanh.f32 %v2485_v61 }
0x2569   :  { %v4279_v28 = vpop.eup %4278 }
0x256a   :  { %v2487_v29 = vmul.f32 %v4279_v28, %v4600_v18 }
0x256c   :  { %v2488_v30 = vadd.f32 %v4605_v21, %v2487_v29 }
0x256e   :  { %2491 = vrot.lane.b32.xlu0 %v2488_v30, %s4318_s18  ;;  %v2489_v33 = vmul.f32 %v2488_v30, %v2403_v22 }
0x25e0   :  { %v2492_v31 = vpop.permute.xlu0 %2491 }
0x25e1   :  { %v2494_v32 = vmul.f32 %v2492_v31, %v2488_v30 }
0x25e3   :  { %2496 = vrot.lane.b32.xlu1 %v2494_v32, %s4319_s19 }
0x2655   :  { %v2497_v34 = vpop.permute.xlu1 %2496 }
0x2656   :  { %v2499_v35 = vadd.f32 %v2497_v34, %v2489_v33 }
0x2658   :  { %4280 = vtanh.f32 %v2499_v35 }
0x2662   :  { %v4281_v36 = vpop.eup %4280 }
0x2663   :  { %2502 = vrot.lane.b32.xlu0 %v4281_v36, %s4318_s18 }
0x26d5   :  { %v2503_v1 = vpop.permute.xlu0 %2502 }
0x26d6   :  { %v2505_v37 = vmul.f32 %v2503_v1, %v2488_v30 }
0x26d8   :  { %2507 = vrot.lane.b32.xlu1 %v2505_v37, %s4319_s19 }
0x274a   :  { %v2508_v38 = vpop.permute.xlu1 %2507 }
0x274b   :  { %3908 = vmatmul.mubr.msk.f32.vlgmr.msra.gmra.mrb[40].mxu1 %vm679_vm2, %v2508_v38 }
0x274c   :  { %4162 = vmatpush3.bf16.msra.mxu1 %v4504_v17  ;;  %3929 = vmatprep.mubr.msk.f32.mxu1 %vm4316_vm1, %v4317_v14 }
0x274d   :  { %4163 = vmatprep.subr.bf16.mxu1 %v4315_v39 }
0x2750   :  { %4165 = vmatpush3.bf16.msra.mxu1 %v4514_v20 }
0x2751   :  { %4172 = vmatprep.subr.bf16.mxu1 %v4315_v39 }
0x281e   :  { %v2577_v40 = vpop.f32.mrb[40].mxu1 }
0x281f   :  { %v2581_v41 = vadd.f32 %v4754_v0, %v2577_v40  ;;  %v3909_v60 = vpop.f32.mrb[41].mxu1 }
0x2821   :  { %4282 = vtanh.f32 %v2581_v41 }
0x282b   :  { %v4283_v42 = vpop.eup %4282 }
0x282c   :  { %v2583_v43 = vmul.f32 %v4283_v42, %v4600_v18 }
0x282e   :  { %v2584_v44 = vadd.f32 %v4605_v21, %v2583_v43 }
0x2830   :  { %2587 = vrot.lane.b32.xlu0 %v2584_v44, %s4318_s18  ;;  %v2585_v47 = vmul.f32 %v2584_v44, %v2499_v35 }
0x28a2   :  { %v2588_v45 = vpop.permute.xlu0 %2587 }
0x28a3   :  { %v2590_v46 = vmul.f32 %v2588_v45, %v2584_v44 }
0x28a5   :  { %2592 = vrot.lane.b32.xlu1 %v2590_v46, %s4319_s19 }
0x2917   :  { %v2593_v48 = vpop.permute.xlu1 %2592 }
0x2918   :  { %v2595_v49 = vadd.f32 %v2593_v48, %v2585_v47  ;;  %v4949_v47 = vld [vmem:[%s5047_s2 + $0x82] ss:$0 sm:$0xff]  ;;  %v4955_v48 = vld [vmem:[%s5047_s2 + $0x83] ss:$0 sm:$0xff] }
0x291a   :  { %4284 = vtanh.f32 %v2595_v49 }
0x2924   :  { %v4285_v50 = vpop.eup %4284 }
0x2925   :  { %2598 = vrot.lane.b32.xlu0 %v4285_v50, %s4318_s18 }
0x2997   :  { %v2599_v0 = vpop.permute.xlu0 %2598 }
0x2998   :  { %v2601_v51 = vmul.f32 %v2599_v0, %v2584_v44 }
0x299a   :  { %2603 = vrot.lane.b32.xlu1 %v2601_v51, %s4319_s19 }
0x2a0c   :  { %v2604_v52 = vpop.permute.xlu1 %2603 }
0x2a0d   :  { %3919 = vmatmul.mubr.msk.f32.vlgmr.msra.gmra.mrb[34].mxu0 %vm679_vm2, %v2604_v52 }
0x2a0e   :  { %4168 = vmatpush3.bf16.msra.mxu0 %v4504_v17  ;;  %3940 = vmatprep.mubr.msk.f32.mxu0 %vm4316_vm1, %v4317_v14 }
0x2a0f   :  { %4169 = vmatprep.subr.bf16.mxu0 %v4315_v39 }
0x2a12   :  { %4171 = vmatpush3.bf16.msra.mxu0 %v4514_v20 }
0x2a13   :  { %4178 = vmatprep.subr.bf16.mxu0 %v4315_v39 }
0x2ae0   :  { %v2673_v53 = vpop.f32.mrb[34].mxu0 }
0x2ae1   :  { %v2677_v54 = vadd.f32 %v2673_v53, %v4760_v3  ;;  %v3920_v55 = vpop.f32.mrb[35].mxu0 }
0x2ae3   :  { %4286 = vtanh.f32 %v2677_v54 }
0x2aed   :  { %v4287_v63 = vpop.eup %4286 }
0x2aee   :  { %v2679_v56 = vmul.f32 %v4287_v63, %v4600_v18 }
0x2af0   :  { %v2680_v57 = vadd.f32 %v4605_v21, %v2679_v56 }
0x2af2   :  { %2683 = vrot.lane.b32.xlu0 %v2680_v57, %s4318_s18  ;;  %v2681_v8 = vmul.f32 %v2680_v57, %v2595_v49 }
0x2b64   :  { %v2684_v58 = vpop.permute.xlu0 %2683 }
0x2b65   :  { %v2686_v59 = vmul.f32 %v2684_v58, %v2680_v57 }
0x2b67   :  { %2688 = vrot.lane.b32.xlu1 %v2686_v59, %s4319_s19 }
0x2bd9   :  { %v2689_v9 = vpop.permute.xlu1 %2688 }
0x2bda   :  { %v2691_v10 = vadd.f32 %v2689_v9, %v2681_v8 }
0x2bdc   :  { %4288 = vtanh.f32 %v2691_v10 }
0x2be6   :  { %v4289_v11 = vpop.eup %4288 }
0x2be7   :  { %2694 = vrot.lane.b32.xlu0 %v4289_v11, %s4318_s18 }
0x2c59   :  { %v2695_v3 = vpop.permute.xlu0 %2694 }
0x2c5a   :  { %v2697_v13 = vmul.f32 %v2695_v3, %v2680_v57 }
0x2c5c   :  { %2699 = vrot.lane.b32.xlu1 %v2697_v13, %s4319_s19 }
0x2cce   :  { %v2700_v15 = vpop.permute.xlu1 %2699 }
0x2ccf   :  { %3930 = vmatmul.mubr.msk.f32.vlgmr.msra.gmra.mrb[42].mxu1 %vm679_vm2, %v2700_v15 }
0x2cd0   :  { %4174 = vmatpush3.bf16.msra.mxu1 %v4504_v17  ;;  %3951 = vmatprep.mubr.msk.f32.mxu1 %vm4316_vm1, %v4317_v14 }
0x2cd1   :  { %4175 = vmatprep.subr.bf16.mxu1 %v4315_v39 }
0x2cd4   :  { %4177 = vmatpush3.bf16.msra.mxu1 %v4514_v20 }
0x2cd5   :  { %4184 = vmatprep.subr.bf16.mxu1 %v4315_v39 }
0x2da2   :  { %v2769_v16 = vpop.f32.mrb[42].mxu1 }
0x2da3   :  { %v2773_v19 = vadd.f32 %v4758_v2, %v2769_v16  ;;  %v3931_v22 = vpop.f32.mrb[43].mxu1 }
0x2da4   :  { %v989_v22 = vld [vmem:[%s5047_s2 + $0x128] sm:$0xff] }
0x2da5   :  { %4290 = vtanh.f32 %v2773_v19  ;;  %v988_v19 = vld [vmem:[%s5047_s2 + $0x120] sm:$0xff] }
0x2daf   :  { %v4291_v23 = vpop.eup %4290 }
0x2db0   :  { %v2775_v62 = vmul.f32 %v4291_v23, %v4600_v18  ;;  %v4197_v23 = vpack.c.bf16 %v989_v22, %v988_v19 }
0x2db2   :  { %v2776_v24 = vadd.f32 %v4605_v21, %v2775_v62  ;;  %v990_v62 = vld [vmem:[%s5047_s2 + $0x130] sm:$0xff] }
0x2db4   :  { %2779 = vrot.lane.b32.xlu0 %v2776_v24, %s4318_s18  ;;  %v2777_v61 = vmul.f32 %v2776_v24, %v2691_v10 }
0x2e26   :  { %v2780_v25 = vpop.permute.xlu0 %2779 }
0x2e27   :  { %v2782_v27 = vmul.f32 %v2780_v25, %v2776_v24 }
0x2e29   :  { %2784 = vrot.lane.b32.xlu1 %v2782_v27, %s4319_s19 }
0x2e9b   :  { %v2785_v26 = vpop.permute.xlu1 %2784 }
0x2e9c   :  { %v2787_v28 = vadd.f32 %v2785_v26, %v2777_v61  ;;  %v992_v61 = vld [vmem:[%s5047_s2 + $0x140] sm:$0xff]  ;;  %v993_v26 = vld [vmem:[%s5047_s2 + $0x148] sm:$0xff] }
0x2e9e   :  { %4292 = vtanh.f32 %v2787_v28 }
0x2ea8   :  { %v4293_v29 = vpop.eup %4292 }
0x2ea9   :  { %2790 = vrot.lane.b32.xlu0 %v4293_v29, %s4318_s18  ;;  %v994_v29 = vld [vmem:[%s5047_s2 + $0x150] sm:$0xff] }
0x2f1b   :  { %v2791_v2 = vpop.permute.xlu0 %2790 }
0x2f1c   :  { %v2793_v30 = vmul.f32 %v2791_v2, %v2776_v24  ;;  %v991_v24 = vld [vmem:[%s5047_s2 + $0x138] sm:$0xff] }
0x2f1d   :  { %v4200_v27 = vpack.c.bf16 %v991_v24, %v990_v62 }
0x2f1e   :  { %2795 = vrot.lane.b32.xlu1 %v2793_v30, %s4319_s19  ;;  %v996_v30 = vld [vmem:[%s5047_s2 + $0x160] sm:$0xff] }
0x2f90   :  { %v2796_v31 = vpop.permute.xlu1 %2795 }
0x2f91   :  { %3941 = vmatmul.mubr.msk.f32.vlgmr.msra.gmra.mrb[36].mxu0 %vm679_vm2, %v2796_v31  ;;  %v997_v31 = vld [vmem:[%s5047_s2 + $0x168] sm:$0xff] }
0x2f92   :  { %4180 = vmatpush3.bf16.msra.mxu0 %v4504_v17  ;;  %3962 = vmatprep.mubr.msk.f32.mxu0 %vm4316_vm1, %v4317_v14 }
0x2f93   :  { %4181 = vmatprep.subr.bf16.mxu0 %v4315_v39 }
0x2f96   :  { %4183 = vmatpush3.bf16.msra.mxu0 %v4514_v20 }
0x2f97   :  { %4190 = vmatprep.subr.bf16.mxu0 %v4315_v39 }
0x3064   :  { %v2865_v32 = vpop.f32.mrb[36].mxu0 }
0x3065   :  { %v2869_v33 = vadd.f32 %v2865_v32, %v4764_v5  ;;  %v3942_v34 = vpop.f32.mrb[37].mxu0  ;;  %v4209_v32 = vpack.c.bf16 %v997_v31, %v996_v30 }
0x3066   :  { %v999_v34 = vld [vmem:[%s5047_s2 + $0x178] sm:$0xff] }
0x3067   :  { %4294 = vtanh.f32 %v2869_v33  ;;  %v998_v33 = vld [vmem:[%s5047_s2 + $0x170] sm:$0xff] }
0x3071   :  { %v4295_v35 = vpop.eup %4294 }
0x3072   :  { %v2871_v36 = vmul.f32 %v4295_v35, %v4600_v18  ;;  %v3359_v35 = vld [vmem:[%s5047_s2 + $0x81] ss:$0 sm:$0xff] }
0x3074   :  { %v2872_v1 = vadd.f32 %v4605_v21, %v2871_v36  ;;  %v4212_v36 = vpack.c.bf16 %v999_v34, %v998_v33 }
0x3076   :  { %2875 = vrot.lane.b32.xlu0 %v2872_v1, %s4318_s18  ;;  %v2873_v40 = vmul.f32 %v2872_v1, %v2787_v28  ;;  %v4203_v28 = vpack.c.bf16 %v993_v26, %v992_v61 }
0x30e8   :  { %v2876_v37 = vpop.permute.xlu0 %2875 }
0x30e9   :  { %v2878_v38 = vmul.f32 %v2876_v37, %v2872_v1 }
0x30eb   :  { %2880 = vrot.lane.b32.xlu1 %v2878_v38, %s4319_s19 }
0x315d   :  { %v2881_v41 = vpop.permute.xlu1 %2880 }
0x315e   :  { %v2883_v60 = vadd.f32 %v2881_v41, %v2873_v40 }
0x3160   :  { %4296 = vtanh.f32 %v2883_v60 }
0x316a   :  { %v4297_v42 = vpop.eup %4296 }
0x316b   :  { %2886 = vrot.lane.b32.xlu0 %v4297_v42, %s4318_s18 }
0x31dd   :  { %v2887_v5 = vpop.permute.xlu0 %2886 }
0x31de   :  { %v2889_v43 = vmul.f32 %v2887_v5, %v2872_v1  ;;  %v986_v1 = vadd.f32 %v3359_v35, %v4595_v12 }
0x31e0   :  { %2891 = vrot.lane.b32.xlu1 %v2889_v43, %s4319_s19  ;;  %v987_v37 = vmax.f32 %v986_v1, 0.0 }
0x3252   :  { %v2892_v18 = vpop.permute.xlu1 %2891 }
0x3253   :  { %3952 = vmatmul.mubr.msk.f32.vlgmr.msra.gmra.mrb[44].mxu1 %vm679_vm2, %v2892_v18 }
0x3254   :  { %4186 = vmatpush3.bf16.msra.mxu1 %v4504_v17  ;;  %3973 = vmatprep.mubr.msk.f32.mxu1 %vm4316_vm1, %v4317_v14 }
0x3255   :  { %4187 = vmatprep.subr.bf16.mxu1 %v4315_v39 }
0x3258   :  { %4189 = vmatpush3.bf16.msra.mxu1 %v4514_v20 }
0x3259   :  { %4196 = vmatprep.subr.bf16.mxu1 %v4315_v39 }
0x3326   :  { %v2961_v21 = vpop.f32.mrb[44].mxu1 }
0x3327   :  { %v2965_v44 = vadd.f32 %v4762_v4, %v2961_v21  ;;  %v3953_v45 = vpop.f32.mrb[45].mxu1 }
0x3329   :  { %4298 = vtanh.f32 %v2965_v44 }
0x3333   :  { %v4299_v46 = vpop.eup %4298 }
0x3334   :  { %v2967_v17 = vmul.f32 %v4949_v47, %v4299_v46 }
0x3336   :  { %v2968_v20 = vadd.f32 %v4955_v48, %v2967_v17  ;;  %v3180_v17 = vld [vmem:[%s5047_s2 + $0x1b8] sm:$0xff] }
0x3338   :  { %2971 = vrot.lane.b32.xlu0 %v2968_v20, %s4318_s18  ;;  %v2969_v50 = vmul.f32 %v2968_v20, %v2883_v60 }
0x33aa   :  { %v2972_v4 = vpop.permute.xlu0 %2971 }
0x33ab   :  { %v2974_v49 = vmul.f32 %v2972_v4, %v2968_v20 }
0x33ad   :  { %2976 = vrot.lane.b32.xlu1 %v2974_v49, %s4319_s19 }
0x341f   :  { %v2977_v0 = vpop.permute.xlu1 %2976 }
0x3420   :  { %v2979_v51 = vadd.f32 %v2977_v0, %v2969_v50 }
0x3422   :  { %4300 = vtanh.f32 %v2979_v51 }
0x342c   :  { %v4301_v52 = vpop.eup %4300 }
0x342d   :  { %2982 = vrot.lane.b32.xlu0 %v4301_v52, %s4318_s18 }
0x349f   :  { %v2983_v53 = vpop.permute.xlu0 %2982 }
0x34a0   :  { %v2985_v54 = vmul.f32 %v2983_v53, %v2968_v20  ;;  %v3181_v20 = vld [vmem:[%s5047_s2 + $0x1c0] sm:$0xff] }
0x34a1   :  { %v4194_v4 = vpack.c.bf16 %v3181_v20, %v3180_v17  ;;  %v3403_v53 = vld [vmem:[%s5047_s2 + $0x84] ss:$0 sm:$0xff] }
0x34a2   :  { %2987 = vrot.lane.b32.xlu1 %v2985_v54, %s4319_s19 }
0x3514   :  { %v2988_v55 = vpop.permute.xlu1 %2987 }
0x3515   :  { %3963 = vmatmul.mubr.msk.f32.vlgmr.msra.gmra.mrb[38].mxu0 %vm679_vm2, %v2988_v55 }
0x3516   :  { %3984 = vmatprep.mubr.msk.f32.mxu0 %vm4316_vm1, %v4317_v14 }
0x35e8   :  { %v3057_v63 = vpop.f32.mrb[38].mxu0 }
0x35e9   :  { %v3061_v56 = vadd.f32 %v3057_v63, %v4768_v7  ;;  %v3964_v57 = vpop.f32.mrb[39].mxu0 }
0x35eb   :  { %4302 = vtanh.f32 %v3061_v56 }
0x35f5   :  { %v4303_v58 = vpop.eup %4302 }
0x35f6   :  { %v3063_v59 = vmul.f32 %v4949_v47, %v4303_v58 }
0x35f8   :  { %v3064_v8 = vadd.f32 %v4955_v48, %v3063_v59 }
0x35fa   :  { %3067 = vrot.lane.b32.xlu0 %v3064_v8, %s4318_s18  ;;  %v3065_v11 = vmul.f32 %v3064_v8, %v2979_v51 }
0x366c   :  { %v3068_v9 = vpop.permute.xlu0 %3067 }
0x366d   :  { %v3070_v10 = vmul.f32 %v3068_v9, %v3064_v8 }
0x366f   :  { %3072 = vrot.lane.b32.xlu1 %v3070_v10, %s4319_s19 }
0x36e1   :  { %v3073_v3 = vpop.permute.xlu1 %3072 }
0x36e2   :  { %v3075_v13 = vadd.f32 %v3073_v3, %v3065_v11 }
0x36e4   :  { %4304 = vtanh.f32 %v3075_v13 }
0x36ee   :  { %v4305_v15 = vpop.eup %4304 }
0x36ef   :  { %3078 = vrot.lane.b32.xlu0 %v4305_v15, %s4318_s18 }
0x3761   :  { %v3079_v7 = vpop.permute.xlu0 %3078 }
0x3762   :  { %v3081_v16 = vmul.f32 %v3079_v7, %v3064_v8 }
0x3764   :  { %3083 = vrot.lane.b32.xlu1 %v3081_v16, %s4319_s19 }
0x37d6   :  { %v3084_v25 = vpop.permute.xlu1 %3083 }
0x37d7   :  { %3974 = vmatmul.mubr.msk.f32.vlgmr.msra.gmra.mrb[46].mxu1 %vm679_vm2, %v3084_v25 }
0x37d8   :  { %4198 = vmatpush3.bf16.msra.mxu1 %v4197_v23  ;;  %4011 = vmatprep.mubr.msk.f32.mxu1 %vm4316_vm1, %v4317_v14  ;;  %v995_v14 = vld [vmem:[%s5047_s2 + $0x158] sm:$0xff] }
0x37d9   :  { %4199 = vmatprep.subr.bf16.mxu1 %v4315_v39  ;;  %v4206_v2 = vpack.c.bf16 %v995_v14, %v994_v29 }
0x37dc   :  { %4201 = vmatpush3.bf16.msra.mxu1 %v4200_v27 }
0x37dd   :  { %4202 = vmatprep.subr.bf16.mxu1 %v4315_v39 }
0x37e0   :  { %4204 = vmatpush3.bf16.msra.mxu1 %v4203_v28 }
0x37e1   :  { %4205 = vmatprep.subr.bf16.mxu1 %v4315_v39 }
0x37e4   :  { %4207 = vmatpush3.bf16.msra.mxu1 %v4206_v2 }
0x37e5   :  { %4208 = vmatprep.subr.bf16.mxu1 %v4315_v39 }
0x37e8   :  { %4210 = vmatpush3.bf16.msra.mxu1 %v4209_v32 }
0x37e9   :  { %4211 = vmatprep.subr.bf16.mxu1 %v4315_v39 }
0x37ec   :  { %4213 = vmatpush3.bf16.msra.mxu1 %v4212_v36 }
0x37ef   :  { %4012 = vmatmul.mubr.msk.f32.vlgmr.msra.gmra.mrb[48].mxu1 %vm3257_vm3, %v987_v37 }
0x38aa   :  { %v3153_v38 = vpop.f32.mrb[46].mxu1 }
0x38ab   :  { %v3157_v40 = vadd.f32 %v4766_v6, %v3153_v38  ;;  %v3975_v41 = vpop.f32.mrb[47].mxu1  ;;  %v3178_v6 = vld [vmem:[%s5047_s2 + $0x1a8] sm:$0xff] }
0x38ad   :  { %4306 = vtanh.f32 %v3157_v40 }
0x38b7   :  { %v4307_v60 = vpop.eup %4306 }
0x38b8   :  { %v3159_v42 = vmul.f32 %v4949_v47, %v4307_v60  ;;  %v3179_v47 = vld [vmem:[%s5047_s2 + $0x1b0] sm:$0xff] }
0x38ba   :  { %v3160_v5 = vadd.f32 %v4955_v48, %v3159_v42  ;;  %v4191_v48 = vpack.c.bf16 %v3179_v47, %v3178_v6 }
0x38bc   :  { %3163 = vrot.lane.b32.xlu0 %v3160_v5, %s4318_s18  ;;  %v3161_v44 = vmul.f32 %v3160_v5, %v3075_v13  ;;  %4192 = vmatpush3.bf16.msra.mxu0 %v4191_v48 }
0x38bd   :  { %4193 = vmatprep.subr.bf16.mxu0 %v4315_v39 }
0x38c0   :  { %4195 = vmatpush3.bf16.msra.mxu0 %v4194_v4 }
0x38c2   :  { %v3327_v43 = vpop.f32.mrb[48].mxu1 }
0x38c3   :  { %v4013_v12 = vpop.f32.mrb[49].mxu1 }
0x392e   :  { %v3164_v18 = vpop.permute.xlu0 %3163 }
0x392f   :  { %v3166_v21 = vmul.f32 %v3164_v18, %v3160_v5 }
0x3931   :  { %3168 = vrot.lane.b32.xlu1 %v3166_v21, %s4319_s19 }
0x39a3   :  { %v3169_v45 = vpop.permute.xlu1 %3168 }
0x39a4   :  { %v3171_v46 = vadd.f32 %v3169_v45, %v3161_v44 }
0x39a6   :  { %4308 = vtanh.f32 %v3171_v46 }
0x39b0   :  { %v4309_v49 = vpop.eup %4308 }
0x39b1   :  { %3174 = vrot.lane.b32.xlu0 %v4309_v49, %s4318_s18 }
0x3a23   :  { %v3175_v50 = vpop.permute.xlu0 %3174 }
0x3a24   :  { %v3177_v0 = vmul.f32 %v3175_v50, %v3160_v5 }
0x3a26   :  { %3183 = vrot.lane.b32.xlu1 %v3177_v0, %s4319_s19 }
0x3a98   :  { %v3184_v51 = vpop.permute.xlu1 %3183 }
0x3a99   :  { %3985 = vmatmul.mubr.msk.f32.vlgmr.msra.gmra.mrb[40].mxu0 %vm679_vm2, %v3184_v51 }
0x3b6c   :  { %v3253_v52 = vpop.f32.mrb[40].mxu0 }
0x3b6d   :  { %v3328_v54 = vadd.f32 %v3327_v43, %v3253_v52  ;;  %v3986_v55 = vpop.f32.mrb[41].mxu0 }
0x3b6f   :  { %v3336_v63 = vadd.f32 %v3403_v53, %v3328_v54 }
0x3b71   :  { %3337 = vst [vmem:[%s5050_s3] sm:$0xff] %v3336_v63 }

</bundles_post_ra>
